<compile_context>
chip_gen: v7x
topology: tpu7x:2x2x1
jax: 0.10.0
libtpu: 0.0.40
codegen_flags: <defaults>
</compile_context>

<pallas_src>
import functools

import jax
import jax.numpy as jnp
from jax.experimental import pallas as pl
from jax.experimental.pallas import tpu as pltpu  # noqa: F401  (TPU backend / params)


def _lstm_fc_kernel(x_ref,
                    wih0_ref, whh0_ref, b0_ref,
                    wih1_ref, whh1_ref, b1_ref,
                    wih2_ref, whh2_ref, b2_ref,
                    wfc_ref, bfc_ref,
                    out_ref,
                    *, T, B):
    # x_ref:   (T*B, F)      time-major flattened input, row = t*B + b
    # wihX:    (in_dim, 4H)  pre-transposed W_ih, gate order [i, f, o, g]
    # whhX:    (H, 4H)       pre-transposed W_hh, gate order [i, f, o, g]
    # bX:      (1, 4H)       b_ih + b_hh, gate order [i, f, o, g]
    # wfc:     (H, F)        pre-transposed fc weight
    # bfc:     (1, F)
    # out_ref: (B, F)
    H = whh0_ref.shape[0]

    def run_layer(seq_2d, wih_ref, whh_ref, b_ref, need_seq):
        # seq_2d: (T*B, in_dim) traced value (stays in vregs / VMEM temps).
        wih = wih_ref[...]                                   # (in_dim, 4H)
        whh = whh_ref[...]                                   # (H, 4H)
        b = b_ref[...]                                       # (1, 4H)

        # Hoisted input projection: one M = T*B matmul instead of T tiny ones.
        gates_x = jnp.dot(seq_2d, wih,
                          preferred_element_type=jnp.float32) + b      # (T*B, 4H)

        # PyTorch default: h0 = c0 = 0 for every layer; state carried as values.
        h = jnp.zeros((B, H), jnp.float32)
        c = jnp.zeros((B, H), jnp.float32)
        outs = []
        for t in range(T):        # T is small and static -> fully unrolled
            gates = gates_x[t * B:(t + 1) * B, :] + jnp.dot(
                h, whh, preferred_element_type=jnp.float32)            # (B, 4H)
            sig = jax.nn.sigmoid(gates[:, :3 * H])            # i, f, o in one EUP pass
            g = jnp.tanh(gates[:, 3 * H:])
            i = sig[:, :H]
            f = sig[:, H:2 * H]
            o = sig[:, 2 * H:]
            c = f * c + i * g
            h = o * jnp.tanh(c)
            if need_seq:
                outs.append(h)
        seq_out = jnp.concatenate(outs, axis=0) if need_seq else None  # (T*B, H)
        return seq_out, h

    seq1, _ = run_layer(x_ref[...], wih0_ref, whh0_ref, b0_ref, need_seq=True)
    seq2, _ = run_layer(seq1, wih1_ref, whh1_ref, b1_ref, need_seq=True)
    _, h_last = run_layer(seq2, wih2_ref, whh2_ref, b2_ref, need_seq=False)

    # output[:, -1, :] of the top layer; nn.Dropout is identity at inference.
    out = jnp.dot(h_last, wfc_ref[...],
                  preferred_element_type=jnp.float32) + bfc_ref[...]
    out_ref[...] = out.astype(out_ref.dtype)


def _full_spec(shape):
    n = len(shape)
    return pl.BlockSpec(shape, lambda *_: (0,) * n)


def prepare_params(params):
    """One-time weight prep: transpose + reorder gates [i,f,g,o] -> [i,f,o,g]."""
    H = params["whh0"].shape[1]

    def reorder(w):   # reorders the 4H gate axis (axis 0), PyTorch layout in
        return jnp.concatenate([w[:2 * H], w[3 * H:4 * H], w[2 * H:3 * H]], axis=0)

    prepped = {}
    for l in range(3):
        prepped[f"wih{l}"] = reorder(params[f"wih{l}"]).T          # (in_dim, 4H)
        prepped[f"whh{l}"] = reorder(params[f"whh{l}"]).T          # (H, 4H)
        prepped[f"b{l}"] = reorder(params[f"b{l}"][0]).reshape(1, 4 * H)
    prepped["wfc"] = params["wfc"].T                               # (H, F)
    prepped["bfc"] = params["bfc"]                                 # (1, F)
    return prepped


def lstm_forward(x, prepped):
    """x: (B, T, F) float32, batch_first like the PyTorch module."""
    B, T, F = x.shape
    # Time-major flattened slab (row = t*B + b); wrapper-side layout plumbing so the
    # kernel never reshapes 3-D values across (8,128) tile boundaries.
    x_2d = jnp.transpose(x, (1, 0, 2)).reshape(T * B, F)

    ins = (x_2d,
           prepped["wih0"], prepped["whh0"], prepped["b0"],
           prepped["wih1"], prepped["whh1"], prepped["b1"],
           prepped["wih2"], prepped["whh2"], prepped["b2"],
           prepped["wfc"], prepped["bfc"])

    kernel = functools.partial(_lstm_fc_kernel, T=T, B=B)

    # TODO(synk): if B grows large, add a batch grid axis with
    # dimension_semantics=("parallel",) to shard across TCs on v7x; at B=2 a single
    # program is correct and the whole working set is a few KiB of VMEM.
    return pl.pallas_call(
        kernel,
        out_shape=jax.ShapeDtypeStruct((B, F), jnp.float32),
        in_specs=[_full_spec(a.shape) for a in ins],
        out_specs=_full_spec((B, F)),
    )(*ins)


def init_params(key, num_feature, hidden_size):
    """Deterministic init matching PyTorch shapes: U(-1/sqrt(H), 1/sqrt(H))."""
    H = hidden_size
    k = 1.0 / float(jnp.sqrt(jnp.float32(H)))
    keys = jax.random.split(key, 14)

    def u(kk, shape):
        return jax.random.uniform(kk, shape, jnp.float32, -k, k)

    params = {}
    in_dims = [num_feature, H, H]
    idx = 0
    for l in range(3):
        params[f"wih{l}"] = u(keys[idx], (4 * H, in_dims[l])); idx += 1
        params[f"whh{l}"] = u(keys[idx], (4 * H, H)); idx += 1
        b_ih = u(keys[idx], (4 * H,)); idx += 1
        b_hh = u(keys[idx], (4 * H,)); idx += 1
        params[f"b{l}"] = (b_ih + b_hh).reshape(1, 4 * H)
    params["wfc"] = u(keys[12], (num_feature, H))
    params["bfc"] = u(keys[13], (num_feature,)).reshape(1, num_feature)
    return params


def reference_forward(x, params):
    """Pure-JAX reference of the eval-mode PyTorch forward (PyTorch gate order)."""
    B, T, F = x.shape
    H = params["whh0"].shape[1]
    inp = x
    for l in range(3):
        wih, whh, b = params[f"wih{l}"], params[f"whh{l}"], params[f"b{l}"][0]
        h = jnp.zeros((B, H), jnp.float32)
        c = jnp.zeros((B, H), jnp.float32)
        outs = []
        for t in range(T):
            gates = inp[:, t, :] @ wih.T + h @ whh.T + b
            i = jax.nn.sigmoid(gates[:, :H])
            f = jax.nn.sigmoid(gates[:, H:2 * H])
            g = jnp.tanh(gates[:, 2 * H:3 * H])
            o = jax.nn.sigmoid(gates[:, 3 * H:])
            c = f * c + i * g
            h = o * jnp.tanh(c)
            outs.append(h)
        inp = jnp.stack(outs, axis=1)
    return inp[:, -1, :] @ params["wfc"].T + params["bfc"][0]


if __name__ == "__main__":
    B, T, F, H = 2, 8, 4, 32
    key = jax.random.PRNGKey(0)
    kx, kp = jax.random.split(key)
    x = jax.random.normal(kx, (B, T, F), jnp.float32)
    params = init_params(kp, F, H)

    prepped = prepare_params(params)          # one-time transpose / gate reorder
    out = lstm_forward(x, prepped)
    out = jax.block_until_ready(out)

    ref = reference_forward(x, params)
    assert out.shape == (B, F)
    assert jnp.allclose(out, ref, atol=1e-5, rtol=1e-5), (out, ref)
    print("KERNEL_OK")
</pallas_src>

<mosaic_0001>
module attributes {stable_mosaic.version = 11 : i64} {
  func.func @_lstm_fc_kernel(%arg0: memref<16x4xf32, #tpu.memory_space<vmem>>, %arg1: memref<4x128xf32, #tpu.memory_space<vmem>>, %arg2: memref<32x128xf32, #tpu.memory_space<vmem>>, %arg3: memref<1x128xf32, #tpu.memory_space<vmem>>, %arg4: memref<32x128xf32, #tpu.memory_space<vmem>>, %arg5: memref<32x128xf32, #tpu.memory_space<vmem>>, %arg6: memref<1x128xf32, #tpu.memory_space<vmem>>, %arg7: memref<32x128xf32, #tpu.memory_space<vmem>>, %arg8: memref<32x128xf32, #tpu.memory_space<vmem>>, %arg9: memref<1x128xf32, #tpu.memory_space<vmem>>, %arg10: memref<32x4xf32, #tpu.memory_space<vmem>>, %arg11: memref<1x4xf32, #tpu.memory_space<vmem>>, %arg12: memref<2x4xf32, #tpu.memory_space<vmem>>) attributes {dimension_semantics = [], scalar_prefetch = 0 : i64, scratch_operands = 0 : i64, tpu.core_type = #tpu.core_type<tc>} {
    %c0 = arith.constant 0 : index
    %c0_0 = arith.constant 0 : index
    %0 = vector.load %arg0[%c0, %c0_0] : memref<16x4xf32, #tpu.memory_space<vmem>>, vector<16x4xf32>
    %c0_1 = arith.constant 0 : index
    %c0_2 = arith.constant 0 : index
    %1 = vector.load %arg1[%c0_1, %c0_2] : memref<4x128xf32, #tpu.memory_space<vmem>>, vector<4x128xf32>
    %c0_3 = arith.constant 0 : index
    %c0_4 = arith.constant 0 : index
    %2 = vector.load %arg2[%c0_3, %c0_4] : memref<32x128xf32, #tpu.memory_space<vmem>>, vector<32x128xf32>
    %c0_5 = arith.constant 0 : index
    %c0_6 = arith.constant 0 : index
    %3 = vector.load %arg3[%c0_5, %c0_6] : memref<1x128xf32, #tpu.memory_space<vmem>>, vector<1x128xf32>
    %cst = arith.constant dense<0.000000e+00> : vector<16x128xf32>
    %4 = tpu.matmul %0, %1, %cst {dimension_numbers = #tpu.dot_dimension_numbers<[1], [0], [0], [1], [0, 0, 1, 1], [], []>} : vector<16x4xf32>, vector<4x128xf32>, vector<16x128xf32> -> vector<16x128xf32>
    %5 = vector.broadcast %3 : vector<1x128xf32> to vector<16x128xf32>
    %6 = arith.addf %4, %5 : vector<16x128xf32>
    %cst_7 = arith.constant 0.000000e+00 : f32
    %7 = vector.broadcast %cst_7 : f32 to vector<2x32xf32>
    %cst_8 = arith.constant 0.000000e+00 : f32
    %8 = vector.broadcast %cst_8 : f32 to vector<2x32xf32>
    %9 = vector.extract_strided_slice %6 {offsets = [0, 0], sizes = [2, 128], strides = [1, 1]} : vector<16x128xf32> to vector<2x128xf32>
    %cst_9 = arith.constant dense<0.000000e+00> : vector<2x128xf32>
    %10 = tpu.matmul %7, %2, %cst_9 {dimension_numbers = #tpu.dot_dimension_numbers<[1], [0], [0], [1], [0, 0, 1, 1], [], []>} : vector<2x32xf32>, vector<32x128xf32>, vector<2x128xf32> -> vector<2x128xf32>
    %11 = arith.addf %9, %10 : vector<2x128xf32>
    %12 = vector.extract_strided_slice %11 {offsets = [0, 0], sizes = [2, 96], strides = [1, 1]} : vector<2x128xf32> to vector<2x96xf32>
    %13 = arith.negf %12 : vector<2x96xf32>
    %14 = math.exp %13 : vector<2x96xf32>
    %cst_10 = arith.constant 1.000000e+00 : f32
    %15 = vector.broadcast %cst_10 : f32 to vector<2x96xf32>
    %16 = arith.addf %15, %14 : vector<2x96xf32>
    %17 = arith.divf %15, %16 : vector<2x96xf32>
    %18 = vector.extract_strided_slice %11 {offsets = [0, 96], sizes = [2, 32], strides = [1, 1]} : vector<2x128xf32> to vector<2x32xf32>
    %19 = math.tanh %18 : vector<2x32xf32>
    %20 = vector.extract_strided_slice %17 {offsets = [0, 0], sizes = [2, 32], strides = [1, 1]} : vector<2x96xf32> to vector<2x32xf32>
    %21 = vector.extract_strided_slice %17 {offsets = [0, 32], sizes = [2, 32], strides = [1, 1]} : vector<2x96xf32> to vector<2x32xf32>
    %22 = vector.extract_strided_slice %17 {offsets = [0, 64], sizes = [2, 32], strides = [1, 1]} : vector<2x96xf32> to vector<2x32xf32>
    %23 = arith.mulf %21, %8 : vector<2x32xf32>
    %24 = arith.mulf %20, %19 : vector<2x32xf32>
    %25 = arith.addf %23, %24 : vector<2x32xf32>
    %26 = math.tanh %25 : vector<2x32xf32>
    %27 = arith.mulf %22, %26 : vector<2x32xf32>
    %28 = vector.extract_strided_slice %6 {offsets = [2, 0], sizes = [2, 128], strides = [1, 1]} : vector<16x128xf32> to vector<2x128xf32>
    %cst_11 = arith.constant dense<0.000000e+00> : vector<2x128xf32>
    %29 = tpu.matmul %27, %2, %cst_11 {dimension_numbers = #tpu.dot_dimension_numbers<[1], [0], [0], [1], [0, 0, 1, 1], [], []>} : vector<2x32xf32>, vector<32x128xf32>, vector<2x128xf32> -> vector<2x128xf32>
    %30 = arith.addf %28, %29 : vector<2x128xf32>
    %31 = vector.extract_strided_slice %30 {offsets = [0, 0], sizes = [2, 96], strides = [1, 1]} : vector<2x128xf32> to vector<2x96xf32>
    %32 = arith.negf %31 : vector<2x96xf32>
    %33 = math.exp %32 : vector<2x96xf32>
    %cst_12 = arith.constant 1.000000e+00 : f32
    %34 = vector.broadcast %cst_12 : f32 to vector<2x96xf32>
    %35 = arith.addf %34, %33 : vector<2x96xf32>
    %36 = arith.divf %34, %35 : vector<2x96xf32>
    %37 = vector.extract_strided_slice %30 {offsets = [0, 96], sizes = [2, 32], strides = [1, 1]} : vector<2x128xf32> to vector<2x32xf32>
    %38 = math.tanh %37 : vector<2x32xf32>
    %39 = vector.extract_strided_slice %36 {offsets = [0, 0], sizes = [2, 32], strides = [1, 1]} : vector<2x96xf32> to vector<2x32xf32>
    %40 = vector.extract_strided_slice %36 {offsets = [0, 32], sizes = [2, 32], strides = [1, 1]} : vector<2x96xf32> to vector<2x32xf32>
    %41 = vector.extract_strided_slice %36 {offsets = [0, 64], sizes = [2, 32], strides = [1, 1]} : vector<2x96xf32> to vector<2x32xf32>
    %42 = arith.mulf %40, %25 : vector<2x32xf32>
    %43 = arith.mulf %39, %38 : vector<2x32xf32>
    %44 = arith.addf %42, %43 : vector<2x32xf32>
    %45 = math.tanh %44 : vector<2x32xf32>
    %46 = arith.mulf %41, %45 : vector<2x32xf32>
    %47 = vector.extract_strided_slice %6 {offsets = [4, 0], sizes = [2, 128], strides = [1, 1]} : vector<16x128xf32> to vector<2x128xf32>
    %cst_13 = arith.constant dense<0.000000e+00> : vector<2x128xf32>
    %48 = tpu.matmul %46, %2, %cst_13 {dimension_numbers = #tpu.dot_dimension_numbers<[1], [0], [0], [1], [0, 0, 1, 1], [], []>} : vector<2x32xf32>, vector<32x128xf32>, vector<2x128xf32> -> vector<2x128xf32>
    %49 = arith.addf %47, %48 : vector<2x128xf32>
    %50 = vector.extract_strided_slice %49 {offsets = [0, 0], sizes = [2, 96], strides = [1, 1]} : vector<2x128xf32> to vector<2x96xf32>
    %51 = arith.negf %50 : vector<2x96xf32>
    %52 = math.exp %51 : vector<2x96xf32>
    %cst_14 = arith.constant 1.000000e+00 : f32
    %53 = vector.broadcast %cst_14 : f32 to vector<2x96xf32>
    %54 = arith.addf %53, %52 : vector<2x96xf32>
    %55 = arith.divf %53, %54 : vector<2x96xf32>
    %56 = vector.extract_strided_slice %49 {offsets = [0, 96], sizes = [2, 32], strides = [1, 1]} : vector<2x128xf32> to vector<2x32xf32>
    %57 = math.tanh %56 : vector<2x32xf32>
    %58 = vector.extract_strided_slice %55 {offsets = [0, 0], sizes = [2, 32], strides = [1, 1]} : vector<2x96xf32> to vector<2x32xf32>
    %59 = vector.extract_strided_slice %55 {offsets = [0, 32], sizes = [2, 32], strides = [1, 1]} : vector<2x96xf32> to vector<2x32xf32>
    %60 = vector.extract_strided_slice %55 {offsets = [0, 64], sizes = [2, 32], strides = [1, 1]} : vector<2x96xf32> to vector<2x32xf32>
    %61 = arith.mulf %59, %44 : vector<2x32xf32>
    %62 = arith.mulf %58, %57 : vector<2x32xf32>
    %63 = arith.addf %61, %62 : vector<2x32xf32>
    %64 = math.tanh %63 : vector<2x32xf32>
    %65 = arith.mulf %60, %64 : vector<2x32xf32>
    %66 = vector.extract_strided_slice %6 {offsets = [6, 0], sizes = [2, 128], strides = [1, 1]} : vector<16x128xf32> to vector<2x128xf32>
    %cst_15 = arith.constant dense<0.000000e+00> : vector<2x128xf32>
    %67 = tpu.matmul %65, %2, %cst_15 {dimension_numbers = #tpu.dot_dimension_numbers<[1], [0], [0], [1], [0, 0, 1, 1], [], []>} : vector<2x32xf32>, vector<32x128xf32>, vector<2x128xf32> -> vector<2x128xf32>
    %68 = arith.addf %66, %67 : vector<2x128xf32>
    %69 = vector.extract_strided_slice %68 {offsets = [0, 0], sizes = [2, 96], strides = [1, 1]} : vector<2x128xf32> to vector<2x96xf32>
    %70 = arith.negf %69 : vector<2x96xf32>
    %71 = math.exp %70 : vector<2x96xf32>
    %cst_16 = arith.constant 1.000000e+00 : f32
    %72 = vector.broadcast %cst_16 : f32 to vector<2x96xf32>
    %73 = arith.addf %72, %71 : vector<2x96xf32>
    %74 = arith.divf %72, %73 : vector<2x96xf32>
    %75 = vector.extract_strided_slice %68 {offsets = [0, 96], sizes = [2, 32], strides = [1, 1]} : vector<2x128xf32> to vector<2x32xf32>
    %76 = math.tanh %75 : vector<2x32xf32>
    %77 = vector.extract_strided_slice %74 {offsets = [0, 0], sizes = [2, 32], strides = [1, 1]} : vector<2x96xf32> to vector<2x32xf32>
    %78 = vector.extract_strided_slice %74 {offsets = [0, 32], sizes = [2, 32], strides = [1, 1]} : vector<2x96xf32> to vector<2x32xf32>
    %79 = vector.extract_strided_slice %74 {offsets = [0, 64], sizes = [2, 32], strides = [1, 1]} : vector<2x96xf32> to vector<2x32xf32>
    %80 = arith.mulf %78, %63 : vector<2x32xf32>
    %81 = arith.mulf %77, %76 : vector<2x32xf32>
    %82 = arith.addf %80, %81 : vector<2x32xf32>
    %83 = math.tanh %82 : vector<2x32xf32>
    %84 = arith.mulf %79, %83 : vector<2x32xf32>
    %85 = vector.extract_strided_slice %6 {offsets = [8, 0], sizes = [2, 128], strides = [1, 1]} : vector<16x128xf32> to vector<2x128xf32>
    %cst_17 = arith.constant dense<0.000000e+00> : vector<2x128xf32>
    %86 = tpu.matmul %84, %2, %cst_17 {dimension_numbers = #tpu.dot_dimension_numbers<[1], [0], [0], [1], [0, 0, 1, 1], [], []>} : vector<2x32xf32>, vector<32x128xf32>, vector<2x128xf32> -> vector<2x128xf32>
    %87 = arith.addf %85, %86 : vector<2x128xf32>
    %88 = vector.extract_strided_slice %87 {offsets = [0, 0], sizes = [2, 96], strides = [1, 1]} : vector<2x128xf32> to vector<2x96xf32>
    %89 = arith.negf %88 : vector<2x96xf32>
    %90 = math.exp %89 : vector<2x96xf32>
    %cst_18 = arith.constant 1.000000e+00 : f32
    %91 = vector.broadcast %cst_18 : f32 to vector<2x96xf32>
    %92 = arith.addf %91, %90 : vector<2x96xf32>
    %93 = arith.divf %91, %92 : vector<2x96xf32>
    %94 = vector.extract_strided_slice %87 {offsets = [0, 96], sizes = [2, 32], strides = [1, 1]} : vector<2x128xf32> to vector<2x32xf32>
    %95 = math.tanh %94 : vector<2x32xf32>
    %96 = vector.extract_strided_slice %93 {offsets = [0, 0], sizes = [2, 32], strides = [1, 1]} : vector<2x96xf32> to vector<2x32xf32>
    %97 = vector.extract_strided_slice %93 {offsets = [0, 32], sizes = [2, 32], strides = [1, 1]} : vector<2x96xf32> to vector<2x32xf32>
    %98 = vector.extract_strided_slice %93 {offsets = [0, 64], sizes = [2, 32], strides = [1, 1]} : vector<2x96xf32> to vector<2x32xf32>
    %99 = arith.mulf %97, %82 : vector<2x32xf32>
    %100 = arith.mulf %96, %95 : vector<2x32xf32>
    %101 = arith.addf %99, %100 : vector<2x32xf32>
    %102 = math.tanh %101 : vector<2x32xf32>
    %103 = arith.mulf %98, %102 : vector<2x32xf32>
    %104 = vector.extract_strided_slice %6 {offsets = [10, 0], sizes = [2, 128], strides = [1, 1]} : vector<16x128xf32> to vector<2x128xf32>
    %cst_19 = arith.constant dense<0.000000e+00> : vector<2x128xf32>
    %105 = tpu.matmul %103, %2, %cst_19 {dimension_numbers = #tpu.dot_dimension_numbers<[1], [0], [0], [1], [0, 0, 1, 1], [], []>} : vector<2x32xf32>, vector<32x128xf32>, vector<2x128xf32> -> vector<2x128xf32>
    %106 = arith.addf %104, %105 : vector<2x128xf32>
    %107 = vector.extract_strided_slice %106 {offsets = [0, 0], sizes = [2, 96], strides = [1, 1]} : vector<2x128xf32> to vector<2x96xf32>
    %108 = arith.negf %107 : vector<2x96xf32>
    %109 = math.exp %108 : vector<2x96xf32>
    %cst_20 = arith.constant 1.000000e+00 : f32
    %110 = vector.broadcast %cst_20 : f32 to vector<2x96xf32>
    %111 = arith.addf %110, %109 : vector<2x96xf32>
    %112 = arith.divf %110, %111 : vector<2x96xf32>
    %113 = vector.extract_strided_slice %106 {offsets = [0, 96], sizes = [2, 32], strides = [1, 1]} : vector<2x128xf32> to vector<2x32xf32>
    %114 = math.tanh %113 : vector<2x32xf32>
    %115 = vector.extract_strided_slice %112 {offsets = [0, 0], sizes = [2, 32], strides = [1, 1]} : vector<2x96xf32> to vector<2x32xf32>
    %116 = vector.extract_strided_slice %112 {offsets = [0, 32], sizes = [2, 32], strides = [1, 1]} : vector<2x96xf32> to vector<2x32xf32>
    %117 = vector.extract_strided_slice %112 {offsets = [0, 64], sizes = [2, 32], strides = [1, 1]} : vector<2x96xf32> to vector<2x32xf32>
    %118 = arith.mulf %116, %101 : vector<2x32xf32>
    %119 = arith.mulf %115, %114 : vector<2x32xf32>
    %120 = arith.addf %118, %119 : vector<2x32xf32>
    %121 = math.tanh %120 : vector<2x32xf32>
    %122 = arith.mulf %117, %121 : vector<2x32xf32>
    %123 = vector.extract_strided_slice %6 {offsets = [12, 0], sizes = [2, 128], strides = [1, 1]} : vector<16x128xf32> to vector<2x128xf32>
    %cst_21 = arith.constant dense<0.000000e+00> : vector<2x128xf32>
    %124 = tpu.matmul %122, %2, %cst_21 {dimension_numbers = #tpu.dot_dimension_numbers<[1], [0], [0], [1], [0, 0, 1, 1], [], []>} : vector<2x32xf32>, vector<32x128xf32>, vector<2x128xf32> -> vector<2x128xf32>
    %125 = arith.addf %123, %124 : vector<2x128xf32>
    %126 = vector.extract_strided_slice %125 {offsets = [0, 0], sizes = [2, 96], strides = [1, 1]} : vector<2x128xf32> to vector<2x96xf32>
    %127 = arith.negf %126 : vector<2x96xf32>
    %128 = math.exp %127 : vector<2x96xf32>
    %cst_22 = arith.constant 1.000000e+00 : f32
    %129 = vector.broadcast %cst_22 : f32 to vector<2x96xf32>
    %130 = arith.addf %129, %128 : vector<2x96xf32>
    %131 = arith.divf %129, %130 : vector<2x96xf32>
    %132 = vector.extract_strided_slice %125 {offsets = [0, 96], sizes = [2, 32], strides = [1, 1]} : vector<2x128xf32> to vector<2x32xf32>
    %133 = math.tanh %132 : vector<2x32xf32>
    %134 = vector.extract_strided_slice %131 {offsets = [0, 0], sizes = [2, 32], strides = [1, 1]} : vector<2x96xf32> to vector<2x32xf32>
    %135 = vector.extract_strided_slice %131 {offsets = [0, 32], sizes = [2, 32], strides = [1, 1]} : vector<2x96xf32> to vector<2x32xf32>
    %136 = vector.extract_strided_slice %131 {offsets = [0, 64], sizes = [2, 32], strides = [1, 1]} : vector<2x96xf32> to vector<2x32xf32>
    %137 = arith.mulf %135, %120 : vector<2x32xf32>
    %138 = arith.mulf %134, %133 : vector<2x32xf32>
    %139 = arith.addf %137, %138 : vector<2x32xf32>
    %140 = math.tanh %139 : vector<2x32xf32>
    %141 = arith.mulf %136, %140 : vector<2x32xf32>
    %142 = vector.extract_strided_slice %6 {offsets = [14, 0], sizes = [2, 128], strides = [1, 1]} : vector<16x128xf32> to vector<2x128xf32>
    %cst_23 = arith.constant dense<0.000000e+00> : vector<2x128xf32>
    %143 = tpu.matmul %141, %2, %cst_23 {dimension_numbers = #tpu.dot_dimension_numbers<[1], [0], [0], [1], [0, 0, 1, 1], [], []>} : vector<2x32xf32>, vector<32x128xf32>, vector<2x128xf32> -> vector<2x128xf32>
    %144 = arith.addf %142, %143 : vector<2x128xf32>
    %145 = vector.extract_strided_slice %144 {offsets = [0, 0], sizes = [2, 96], strides = [1, 1]} : vector<2x128xf32> to vector<2x96xf32>
    %146 = arith.negf %145 : vector<2x96xf32>
    %147 = math.exp %146 : vector<2x96xf32>
    %cst_24 = arith.constant 1.000000e+00 : f32
    %148 = vector.broadcast %cst_24 : f32 to vector<2x96xf32>
    %149 = arith.addf %148, %147 : vector<2x96xf32>
    %150 = arith.divf %148, %149 : vector<2x96xf32>
    %151 = vector.extract_strided_slice %144 {offsets = [0, 96], sizes = [2, 32], strides = [1, 1]} : vector<2x128xf32> to vector<2x32xf32>
    %152 = math.tanh %151 : vector<2x32xf32>
    %153 = vector.extract_strided_slice %150 {offsets = [0, 0], sizes = [2, 32], strides = [1, 1]} : vector<2x96xf32> to vector<2x32xf32>
    %154 = vector.extract_strided_slice %150 {offsets = [0, 32], sizes = [2, 32], strides = [1, 1]} : vector<2x96xf32> to vector<2x32xf32>
    %155 = vector.extract_strided_slice %150 {offsets = [0, 64], sizes = [2, 32], strides = [1, 1]} : vector<2x96xf32> to vector<2x32xf32>
    %156 = arith.mulf %154, %139 : vector<2x32xf32>
    %157 = arith.mulf %153, %152 : vector<2x32xf32>
    %158 = arith.addf %156, %157 : vector<2x32xf32>
    %159 = math.tanh %158 : vector<2x32xf32>
    %160 = arith.mulf %155, %159 : vector<2x32xf32>
    %161 = tpu.concatenate %27, %46, %65, %84, %103, %122, %141, %160 in 0 : vector<2x32xf32>, vector<2x32xf32>, vector<2x32xf32>, vector<2x32xf32>, vector<2x32xf32>, vector<2x32xf32>, vector<2x32xf32>, vector<2x32xf32> -> vector<16x32xf32>
    %c0_25 = arith.constant 0 : index
    %c0_26 = arith.constant 0 : index
    %162 = vector.load %arg4[%c0_25, %c0_26] : memref<32x128xf32, #tpu.memory_space<vmem>>, vector<32x128xf32>
    %c0_27 = arith.constant 0 : index
    %c0_28 = arith.constant 0 : index
    %163 = vector.load %arg5[%c0_27, %c0_28] : memref<32x128xf32, #tpu.memory_space<vmem>>, vector<32x128xf32>
    %c0_29 = arith.constant 0 : index
    %c0_30 = arith.constant 0 : index
    %164 = vector.load %arg6[%c0_29, %c0_30] : memref<1x128xf32, #tpu.memory_space<vmem>>, vector<1x128xf32>
    %cst_31 = arith.constant dense<0.000000e+00> : vector<16x128xf32>
    %165 = tpu.matmul %161, %162, %cst_31 {dimension_numbers = #tpu.dot_dimension_numbers<[1], [0], [0], [1], [0, 0, 1, 1], [], []>} : vector<16x32xf32>, vector<32x128xf32>, vector<16x128xf32> -> vector<16x128xf32>
    %166 = vector.broadcast %164 : vector<1x128xf32> to vector<16x128xf32>
    %167 = arith.addf %165, %166 : vector<16x128xf32>
    %cst_32 = arith.constant 0.000000e+00 : f32
    %168 = vector.broadcast %cst_32 : f32 to vector<2x32xf32>
    %cst_33 = arith.constant 0.000000e+00 : f32
    %169 = vector.broadcast %cst_33 : f32 to vector<2x32xf32>
    %170 = vector.extract_strided_slice %167 {offsets = [0, 0], sizes = [2, 128], strides = [1, 1]} : vector<16x128xf32> to vector<2x128xf32>
    %cst_34 = arith.constant dense<0.000000e+00> : vector<2x128xf32>
    %171 = tpu.matmul %168, %163, %cst_34 {dimension_numbers = #tpu.dot_dimension_numbers<[1], [0], [0], [1], [0, 0, 1, 1], [], []>} : vector<2x32xf32>, vector<32x128xf32>, vector<2x128xf32> -> vector<2x128xf32>
    %172 = arith.addf %170, %171 : vector<2x128xf32>
    %173 = vector.extract_strided_slice %172 {offsets = [0, 0], sizes = [2, 96], strides = [1, 1]} : vector<2x128xf32> to vector<2x96xf32>
    %174 = arith.negf %173 : vector<2x96xf32>
    %175 = math.exp %174 : vector<2x96xf32>
    %cst_35 = arith.constant 1.000000e+00 : f32
    %176 = vector.broadcast %cst_35 : f32 to vector<2x96xf32>
    %177 = arith.addf %176, %175 : vector<2x96xf32>
    %178 = arith.divf %176, %177 : vector<2x96xf32>
    %179 = vector.extract_strided_slice %172 {offsets = [0, 96], sizes = [2, 32], strides = [1, 1]} : vector<2x128xf32> to vector<2x32xf32>
    %180 = math.tanh %179 : vector<2x32xf32>
    %181 = vector.extract_strided_slice %178 {offsets = [0, 0], sizes = [2, 32], strides = [1, 1]} : vector<2x96xf32> to vector<2x32xf32>
    %182 = vector.extract_strided_slice %178 {offsets = [0, 32], sizes = [2, 32], strides = [1, 1]} : vector<2x96xf32> to vector<2x32xf32>
    %183 = vector.extract_strided_slice %178 {offsets = [0, 64], sizes = [2, 32], strides = [1, 1]} : vector<2x96xf32> to vector<2x32xf32>
    %184 = arith.mulf %182, %169 : vector<2x32xf32>
    %185 = arith.mulf %181, %180 : vector<2x32xf32>
    %186 = arith.addf %184, %185 : vector<2x32xf32>
    %187 = math.tanh %186 : vector<2x32xf32>
    %188 = arith.mulf %183, %187 : vector<2x32xf32>
    %189 = vector.extract_strided_slice %167 {offsets = [2, 0], sizes = [2, 128], strides = [1, 1]} : vector<16x128xf32> to vector<2x128xf32>
    %cst_36 = arith.constant dense<0.000000e+00> : vector<2x128xf32>
    %190 = tpu.matmul %188, %163, %cst_36 {dimension_numbers = #tpu.dot_dimension_numbers<[1], [0], [0], [1], [0, 0, 1, 1], [], []>} : vector<2x32xf32>, vector<32x128xf32>, vector<2x128xf32> -> vector<2x128xf32>
    %191 = arith.addf %189, %190 : vector<2x128xf32>
    %192 = vector.extract_strided_slice %191 {offsets = [0, 0], sizes = [2, 96], strides = [1, 1]} : vector<2x128xf32> to vector<2x96xf32>
    %193 = arith.negf %192 : vector<2x96xf32>
    %194 = math.exp %193 : vector<2x96xf32>
    %cst_37 = arith.constant 1.000000e+00 : f32
    %195 = vector.broadcast %cst_37 : f32 to vector<2x96xf32>
    %196 = arith.addf %195, %194 : vector<2x96xf32>
    %197 = arith.divf %195, %196 : vector<2x96xf32>
    %198 = vector.extract_strided_slice %191 {offsets = [0, 96], sizes = [2, 32], strides = [1, 1]} : vector<2x128xf32> to vector<2x32xf32>
    %199 = math.tanh %198 : vector<2x32xf32>
    %200 = vector.extract_strided_slice %197 {offsets = [0, 0], sizes = [2, 32], strides = [1, 1]} : vector<2x96xf32> to vector<2x32xf32>
    %201 = vector.extract_strided_slice %197 {offsets = [0, 32], sizes = [2, 32], strides = [1, 1]} : vector<2x96xf32> to vector<2x32xf32>
    %202 = vector.extract_strided_slice %197 {offsets = [0, 64], sizes = [2, 32], strides = [1, 1]} : vector<2x96xf32> to vector<2x32xf32>
    %203 = arith.mulf %201, %186 : vector<2x32xf32>
    %204 = arith.mulf %200, %199 : vector<2x32xf32>
    %205 = arith.addf %203, %204 : vector<2x32xf32>
    %206 = math.tanh %205 : vector<2x32xf32>
    %207 = arith.mulf %202, %206 : vector<2x32xf32>
    %208 = vector.extract_strided_slice %167 {offsets = [4, 0], sizes = [2, 128], strides = [1, 1]} : vector<16x128xf32> to vector<2x128xf32>
    %cst_38 = arith.constant dense<0.000000e+00> : vector<2x128xf32>
    %209 = tpu.matmul %207, %163, %cst_38 {dimension_numbers = #tpu.dot_dimension_numbers<[1], [0], [0], [1], [0, 0, 1, 1], [], []>} : vector<2x32xf32>, vector<32x128xf32>, vector<2x128xf32> -> vector<2x128xf32>
    %210 = arith.addf %208, %209 : vector<2x128xf32>
    %211 = vector.extract_strided_slice %210 {offsets = [0, 0], sizes = [2, 96], strides = [1, 1]} : vector<2x128xf32> to vector<2x96xf32>
    %212 = arith.negf %211 : vector<2x96xf32>
    %213 = math.exp %212 : vector<2x96xf32>
    %cst_39 = arith.constant 1.000000e+00 : f32
    %214 = vector.broadcast %cst_39 : f32 to vector<2x96xf32>
    %215 = arith.addf %214, %213 : vector<2x96xf32>
    %216 = arith.divf %214, %215 : vector<2x96xf32>
    %217 = vector.extract_strided_slice %210 {offsets = [0, 96], sizes = [2, 32], strides = [1, 1]} : vector<2x128xf32> to vector<2x32xf32>
    %218 = math.tanh %217 : vector<2x32xf32>
    %219 = vector.extract_strided_slice %216 {offsets = [0, 0], sizes = [2, 32], strides = [1, 1]} : vector<2x96xf32> to vector<2x32xf32>
    %220 = vector.extract_strided_slice %216 {offsets = [0, 32], sizes = [2, 32], strides = [1, 1]} : vector<2x96xf32> to vector<2x32xf32>
    %221 = vector.extract_strided_slice %216 {offsets = [0, 64], sizes = [2, 32], strides = [1, 1]} : vector<2x96xf32> to vector<2x32xf32>
    %222 = arith.mulf %220, %205 : vector<2x32xf32>
    %223 = arith.mulf %219, %218 : vector<2x32xf32>
    %224 = arith.addf %222, %223 : vector<2x32xf32>
    %225 = math.tanh %224 : vector<2x32xf32>
    %226 = arith.mulf %221, %225 : vector<2x32xf32>
    %227 = vector.extract_strided_slice %167 {offsets = [6, 0], sizes = [2, 128], strides = [1, 1]} : vector<16x128xf32> to vector<2x128xf32>
    %cst_40 = arith.constant dense<0.000000e+00> : vector<2x128xf32>
    %228 = tpu.matmul %226, %163, %cst_40 {dimension_numbers = #tpu.dot_dimension_numbers<[1], [0], [0], [1], [0, 0, 1, 1], [], []>} : vector<2x32xf32>, vector<32x128xf32>, vector<2x128xf32> -> vector<2x128xf32>
    %229 = arith.addf %227, %228 : vector<2x128xf32>
    %230 = vector.extract_strided_slice %229 {offsets = [0, 0], sizes = [2, 96], strides = [1, 1]} : vector<2x128xf32> to vector<2x96xf32>
    %231 = arith.negf %230 : vector<2x96xf32>
    %232 = math.exp %231 : vector<2x96xf32>
    %cst_41 = arith.constant 1.000000e+00 : f32
    %233 = vector.broadcast %cst_41 : f32 to vector<2x96xf32>
    %234 = arith.addf %233, %232 : vector<2x96xf32>
    %235 = arith.divf %233, %234 : vector<2x96xf32>
    %236 = vector.extract_strided_slice %229 {offsets = [0, 96], sizes = [2, 32], strides = [1, 1]} : vector<2x128xf32> to vector<2x32xf32>
    %237 = math.tanh %236 : vector<2x32xf32>
    %238 = vector.extract_strided_slice %235 {offsets = [0, 0], sizes = [2, 32], strides = [1, 1]} : vector<2x96xf32> to vector<2x32xf32>
    %239 = vector.extract_strided_slice %235 {offsets = [0, 32], sizes = [2, 32], strides = [1, 1]} : vector<2x96xf32> to vector<2x32xf32>
    %240 = vector.extract_strided_slice %235 {offsets = [0, 64], sizes = [2, 32], strides = [1, 1]} : vector<2x96xf32> to vector<2x32xf32>
    %241 = arith.mulf %239, %224 : vector<2x32xf32>
    %242 = arith.mulf %238, %237 : vector<2x32xf32>
    %243 = arith.addf %241, %242 : vector<2x32xf32>
    %244 = math.tanh %243 : vector<2x32xf32>
    %245 = arith.mulf %240, %244 : vector<2x32xf32>
    %246 = vector.extract_strided_slice %167 {offsets = [8, 0], sizes = [2, 128], strides = [1, 1]} : vector<16x128xf32> to vector<2x128xf32>
    %cst_42 = arith.constant dense<0.000000e+00> : vector<2x128xf32>
    %247 = tpu.matmul %245, %163, %cst_42 {dimension_numbers = #tpu.dot_dimension_numbers<[1], [0], [0], [1], [0, 0, 1, 1], [], []>} : vector<2x32xf32>, vector<32x128xf32>, vector<2x128xf32> -> vector<2x128xf32>
    %248 = arith.addf %246, %247 : vector<2x128xf32>
    %249 = vector.extract_strided_slice %248 {offsets = [0, 0], sizes = [2, 96], strides = [1, 1]} : vector<2x128xf32> to vector<2x96xf32>
    %250 = arith.negf %249 : vector<2x96xf32>
    %251 = math.exp %250 : vector<2x96xf32>
    %cst_43 = arith.constant 1.000000e+00 : f32
    %252 = vector.broadcast %cst_43 : f32 to vector<2x96xf32>
    %253 = arith.addf %252, %251 : vector<2x96xf32>
    %254 = arith.divf %252, %253 : vector<2x96xf32>
    %255 = vector.extract_strided_slice %248 {offsets = [0, 96], sizes = [2, 32], strides = [1, 1]} : vector<2x128xf32> to vector<2x32xf32>
    %256 = math.tanh %255 : vector<2x32xf32>
    %257 = vector.extract_strided_slice %254 {offsets = [0, 0], sizes = [2, 32], strides = [1, 1]} : vector<2x96xf32> to vector<2x32xf32>
    %258 = vector.extract_strided_slice %254 {offsets = [0, 32], sizes = [2, 32], strides = [1, 1]} : vector<2x96xf32> to vector<2x32xf32>
    %259 = vector.extract_strided_slice %254 {offsets = [0, 64], sizes = [2, 32], strides = [1, 1]} : vector<2x96xf32> to vector<2x32xf32>
    %260 = arith.mulf %258, %243 : vector<2x32xf32>
    %261 = arith.mulf %257, %256 : vector<2x32xf32>
    %262 = arith.addf %260, %261 : vector<2x32xf32>
    %263 = math.tanh %262 : vector<2x32xf32>
    %264 = arith.mulf %259, %263 : vector<2x32xf32>
    %265 = vector.extract_strided_slice %167 {offsets = [10, 0], sizes = [2, 128], strides = [1, 1]} : vector<16x128xf32> to vector<2x128xf32>
    %cst_44 = arith.constant dense<0.000000e+00> : vector<2x128xf32>
    %266 = tpu.matmul %264, %163, %cst_44 {dimension_numbers = #tpu.dot_dimension_numbers<[1], [0], [0], [1], [0, 0, 1, 1], [], []>} : vector<2x32xf32>, vector<32x128xf32>, vector<2x128xf32> -> vector<2x128xf32>
    %267 = arith.addf %265, %266 : vector<2x128xf32>
    %268 = vector.extract_strided_slice %267 {offsets = [0, 0], sizes = [2, 96], strides = [1, 1]} : vector<2x128xf32> to vector<2x96xf32>
    %269 = arith.negf %268 : vector<2x96xf32>
    %270 = math.exp %269 : vector<2x96xf32>
    %cst_45 = arith.constant 1.000000e+00 : f32
    %271 = vector.broadcast %cst_45 : f32 to vector<2x96xf32>
    %272 = arith.addf %271, %270 : vector<2x96xf32>
    %273 = arith.divf %271, %272 : vector<2x96xf32>
    %274 = vector.extract_strided_slice %267 {offsets = [0, 96], sizes = [2, 32], strides = [1, 1]} : vector<2x128xf32> to vector<2x32xf32>
    %275 = math.tanh %274 : vector<2x32xf32>
    %276 = vector.extract_strided_slice %273 {offsets = [0, 0], sizes = [2, 32], strides = [1, 1]} : vector<2x96xf32> to vector<2x32xf32>
    %277 = vector.extract_strided_slice %273 {offsets = [0, 32], sizes = [2, 32], strides = [1, 1]} : vector<2x96xf32> to vector<2x32xf32>
    %278 = vector.extract_strided_slice %273 {offsets = [0, 64], sizes = [2, 32], strides = [1, 1]} : vector<2x96xf32> to vector<2x32xf32>
    %279 = arith.mulf %277, %262 : vector<2x32xf32>
    %280 = arith.mulf %276, %275 : vector<2x32xf32>
    %281 = arith.addf %279, %280 : vector<2x32xf32>
    %282 = math.tanh %281 : vector<2x32xf32>
    %283 = arith.mulf %278, %282 : vector<2x32xf32>
    %284 = vector.extract_strided_slice %167 {offsets = [12, 0], sizes = [2, 128], strides = [1, 1]} : vector<16x128xf32> to vector<2x128xf32>
    %cst_46 = arith.constant dense<0.000000e+00> : vector<2x128xf32>
    %285 = tpu.matmul %283, %163, %cst_46 {dimension_numbers = #tpu.dot_dimension_numbers<[1], [0], [0], [1], [0, 0, 1, 1], [], []>} : vector<2x32xf32>, vector<32x128xf32>, vector<2x128xf32> -> vector<2x128xf32>
    %286 = arith.addf %284, %285 : vector<2x128xf32>
    %287 = vector.extract_strided_slice %286 {offsets = [0, 0], sizes = [2, 96], strides = [1, 1]} : vector<2x128xf32> to vector<2x96xf32>
    %288 = arith.negf %287 : vector<2x96xf32>
    %289 = math.exp %288 : vector<2x96xf32>
    %cst_47 = arith.constant 1.000000e+00 : f32
    %290 = vector.broadcast %cst_47 : f32 to vector<2x96xf32>
    %291 = arith.addf %290, %289 : vector<2x96xf32>
    %292 = arith.divf %290, %291 : vector<2x96xf32>
    %293 = vector.extract_strided_slice %286 {offsets = [0, 96], sizes = [2, 32], strides = [1, 1]} : vector<2x128xf32> to vector<2x32xf32>
    %294 = math.tanh %293 : vector<2x32xf32>
    %295 = vector.extract_strided_slice %292 {offsets = [0, 0], sizes = [2, 32], strides = [1, 1]} : vector<2x96xf32> to vector<2x32xf32>
    %296 = vector.extract_strided_slice %292 {offsets = [0, 32], sizes = [2, 32], strides = [1, 1]} : vector<2x96xf32> to vector<2x32xf32>
    %297 = vector.extract_strided_slice %292 {offsets = [0, 64], sizes = [2, 32], strides = [1, 1]} : vector<2x96xf32> to vector<2x32xf32>
    %298 = arith.mulf %296, %281 : vector<2x32xf32>
    %299 = arith.mulf %295, %294 : vector<2x32xf32>
    %300 = arith.addf %298, %299 : vector<2x32xf32>
    %301 = math.tanh %300 : vector<2x32xf32>
    %302 = arith.mulf %297, %301 : vector<2x32xf32>
    %303 = vector.extract_strided_slice %167 {offsets = [14, 0], sizes = [2, 128], strides = [1, 1]} : vector<16x128xf32> to vector<2x128xf32>
    %cst_48 = arith.constant dense<0.000000e+00> : vector<2x128xf32>
    %304 = tpu.matmul %302, %163, %cst_48 {dimension_numbers = #tpu.dot_dimension_numbers<[1], [0], [0], [1], [0, 0, 1, 1], [], []>} : vector<2x32xf32>, vector<32x128xf32>, vector<2x128xf32> -> vector<2x128xf32>
    %305 = arith.addf %303, %304 : vector<2x128xf32>
    %306 = vector.extract_strided_slice %305 {offsets = [0, 0], sizes = [2, 96], strides = [1, 1]} : vector<2x128xf32> to vector<2x96xf32>
    %307 = arith.negf %306 : vector<2x96xf32>
    %308 = math.exp %307 : vector<2x96xf32>
    %cst_49 = arith.constant 1.000000e+00 : f32
    %309 = vector.broadcast %cst_49 : f32 to vector<2x96xf32>
    %310 = arith.addf %309, %308 : vector<2x96xf32>
    %311 = arith.divf %309, %310 : vector<2x96xf32>
    %312 = vector.extract_strided_slice %305 {offsets = [0, 96], sizes = [2, 32], strides = [1, 1]} : vector<2x128xf32> to vector<2x32xf32>
    %313 = math.tanh %312 : vector<2x32xf32>
    %314 = vector.extract_strided_slice %311 {offsets = [0, 0], sizes = [2, 32], strides = [1, 1]} : vector<2x96xf32> to vector<2x32xf32>
    %315 = vector.extract_strided_slice %311 {offsets = [0, 32], sizes = [2, 32], strides = [1, 1]} : vector<2x96xf32> to vector<2x32xf32>
    %316 = vector.extract_strided_slice %311 {offsets = [0, 64], sizes = [2, 32], strides = [1, 1]} : vector<2x96xf32> to vector<2x32xf32>
    %317 = arith.mulf %315, %300 : vector<2x32xf32>
    %318 = arith.mulf %314, %313 : vector<2x32xf32>
    %319 = arith.addf %317, %318 : vector<2x32xf32>
    %320 = math.tanh %319 : vector<2x32xf32>
    %321 = arith.mulf %316, %320 : vector<2x32xf32>
    %322 = tpu.concatenate %188, %207, %226, %245, %264, %283, %302, %321 in 0 : vector<2x32xf32>, vector<2x32xf32>, vector<2x32xf32>, vector<2x32xf32>, vector<2x32xf32>, vector<2x32xf32>, vector<2x32xf32>, vector<2x32xf32> -> vector<16x32xf32>
    %c0_50 = arith.constant 0 : index
    %c0_51 = arith.constant 0 : index
    %323 = vector.load %arg7[%c0_50, %c0_51] : memref<32x128xf32, #tpu.memory_space<vmem>>, vector<32x128xf32>
    %c0_52 = arith.constant 0 : index
    %c0_53 = arith.constant 0 : index
    %324 = vector.load %arg8[%c0_52, %c0_53] : memref<32x128xf32, #tpu.memory_space<vmem>>, vector<32x128xf32>
    %c0_54 = arith.constant 0 : index
    %c0_55 = arith.constant 0 : index
    %325 = vector.load %arg9[%c0_54, %c0_55] : memref<1x128xf32, #tpu.memory_space<vmem>>, vector<1x128xf32>
    %cst_56 = arith.constant dense<0.000000e+00> : vector<16x128xf32>
    %326 = tpu.matmul %322, %323, %cst_56 {dimension_numbers = #tpu.dot_dimension_numbers<[1], [0], [0], [1], [0, 0, 1, 1], [], []>} : vector<16x32xf32>, vector<32x128xf32>, vector<16x128xf32> -> vector<16x128xf32>
    %327 = vector.broadcast %325 : vector<1x128xf32> to vector<16x128xf32>
    %328 = arith.addf %326, %327 : vector<16x128xf32>
    %cst_57 = arith.constant 0.000000e+00 : f32
    %329 = vector.broadcast %cst_57 : f32 to vector<2x32xf32>
    %cst_58 = arith.constant 0.000000e+00 : f32
    %330 = vector.broadcast %cst_58 : f32 to vector<2x32xf32>
    %331 = vector.extract_strided_slice %328 {offsets = [0, 0], sizes = [2, 128], strides = [1, 1]} : vector<16x128xf32> to vector<2x128xf32>
    %cst_59 = arith.constant dense<0.000000e+00> : vector<2x128xf32>
    %332 = tpu.matmul %329, %324, %cst_59 {dimension_numbers = #tpu.dot_dimension_numbers<[1], [0], [0], [1], [0, 0, 1, 1], [], []>} : vector<2x32xf32>, vector<32x128xf32>, vector<2x128xf32> -> vector<2x128xf32>
    %333 = arith.addf %331, %332 : vector<2x128xf32>
    %334 = vector.extract_strided_slice %333 {offsets = [0, 0], sizes = [2, 96], strides = [1, 1]} : vector<2x128xf32> to vector<2x96xf32>
    %335 = arith.negf %334 : vector<2x96xf32>
    %336 = math.exp %335 : vector<2x96xf32>
    %cst_60 = arith.constant 1.000000e+00 : f32
    %337 = vector.broadcast %cst_60 : f32 to vector<2x96xf32>
    %338 = arith.addf %337, %336 : vector<2x96xf32>
    %339 = arith.divf %337, %338 : vector<2x96xf32>
    %340 = vector.extract_strided_slice %333 {offsets = [0, 96], sizes = [2, 32], strides = [1, 1]} : vector<2x128xf32> to vector<2x32xf32>
    %341 = math.tanh %340 : vector<2x32xf32>
    %342 = vector.extract_strided_slice %339 {offsets = [0, 0], sizes = [2, 32], strides = [1, 1]} : vector<2x96xf32> to vector<2x32xf32>
    %343 = vector.extract_strided_slice %339 {offsets = [0, 32], sizes = [2, 32], strides = [1, 1]} : vector<2x96xf32> to vector<2x32xf32>
    %344 = vector.extract_strided_slice %339 {offsets = [0, 64], sizes = [2, 32], strides = [1, 1]} : vector<2x96xf32> to vector<2x32xf32>
    %345 = arith.mulf %343, %330 : vector<2x32xf32>
    %346 = arith.mulf %342, %341 : vector<2x32xf32>
    %347 = arith.addf %345, %346 : vector<2x32xf32>
    %348 = math.tanh %347 : vector<2x32xf32>
    %349 = arith.mulf %344, %348 : vector<2x32xf32>
    %350 = vector.extract_strided_slice %328 {offsets = [2, 0], sizes = [2, 128], strides = [1, 1]} : vector<16x128xf32> to vector<2x128xf32>
    %cst_61 = arith.constant dense<0.000000e+00> : vector<2x128xf32>
    %351 = tpu.matmul %349, %324, %cst_61 {dimension_numbers = #tpu.dot_dimension_numbers<[1], [0], [0], [1], [0, 0, 1, 1], [], []>} : vector<2x32xf32>, vector<32x128xf32>, vector<2x128xf32> -> vector<2x128xf32>
    %352 = arith.addf %350, %351 : vector<2x128xf32>
    %353 = vector.extract_strided_slice %352 {offsets = [0, 0], sizes = [2, 96], strides = [1, 1]} : vector<2x128xf32> to vector<2x96xf32>
    %354 = arith.negf %353 : vector<2x96xf32>
    %355 = math.exp %354 : vector<2x96xf32>
    %cst_62 = arith.constant 1.000000e+00 : f32
    %356 = vector.broadcast %cst_62 : f32 to vector<2x96xf32>
    %357 = arith.addf %356, %355 : vector<2x96xf32>
    %358 = arith.divf %356, %357 : vector<2x96xf32>
    %359 = vector.extract_strided_slice %352 {offsets = [0, 96], sizes = [2, 32], strides = [1, 1]} : vector<2x128xf32> to vector<2x32xf32>
    %360 = math.tanh %359 : vector<2x32xf32>
    %361 = vector.extract_strided_slice %358 {offsets = [0, 0], sizes = [2, 32], strides = [1, 1]} : vector<2x96xf32> to vector<2x32xf32>
    %362 = vector.extract_strided_slice %358 {offsets = [0, 32], sizes = [2, 32], strides = [1, 1]} : vector<2x96xf32> to vector<2x32xf32>
    %363 = vector.extract_strided_slice %358 {offsets = [0, 64], sizes = [2, 32], strides = [1, 1]} : vector<2x96xf32> to vector<2x32xf32>
    %364 = arith.mulf %362, %347 : vector<2x32xf32>
    %365 = arith.mulf %361, %360 : vector<2x32xf32>
    %366 = arith.addf %364, %365 : vector<2x32xf32>
    %367 = math.tanh %366 : vector<2x32xf32>
    %368 = arith.mulf %363, %367 : vector<2x32xf32>
    %369 = vector.extract_strided_slice %328 {offsets = [4, 0], sizes = [2, 128], strides = [1, 1]} : vector<16x128xf32> to vector<2x128xf32>
    %cst_63 = arith.constant dense<0.000000e+00> : vector<2x128xf32>
    %370 = tpu.matmul %368, %324, %cst_63 {dimension_numbers = #tpu.dot_dimension_numbers<[1], [0], [0], [1], [0, 0, 1, 1], [], []>} : vector<2x32xf32>, vector<32x128xf32>, vector<2x128xf32> -> vector<2x128xf32>
    %371 = arith.addf %369, %370 : vector<2x128xf32>
    %372 = vector.extract_strided_slice %371 {offsets = [0, 0], sizes = [2, 96], strides = [1, 1]} : vector<2x128xf32> to vector<2x96xf32>
    %373 = arith.negf %372 : vector<2x96xf32>
    %374 = math.exp %373 : vector<2x96xf32>
    %cst_64 = arith.constant 1.000000e+00 : f32
    %375 = vector.broadcast %cst_64 : f32 to vector<2x96xf32>
    %376 = arith.addf %375, %374 : vector<2x96xf32>
    %377 = arith.divf %375, %376 : vector<2x96xf32>
    %378 = vector.extract_strided_slice %371 {offsets = [0, 96], sizes = [2, 32], strides = [1, 1]} : vector<2x128xf32> to vector<2x32xf32>
    %379 = math.tanh %378 : vector<2x32xf32>
    %380 = vector.extract_strided_slice %377 {offsets = [0, 0], sizes = [2, 32], strides = [1, 1]} : vector<2x96xf32> to vector<2x32xf32>
    %381 = vector.extract_strided_slice %377 {offsets = [0, 32], sizes = [2, 32], strides = [1, 1]} : vector<2x96xf32> to vector<2x32xf32>
    %382 = vector.extract_strided_slice %377 {offsets = [0, 64], sizes = [2, 32], strides = [1, 1]} : vector<2x96xf32> to vector<2x32xf32>
    %383 = arith.mulf %381, %366 : vector<2x32xf32>
    %384 = arith.mulf %380, %379 : vector<2x32xf32>
    %385 = arith.addf %383, %384 : vector<2x32xf32>
    %386 = math.tanh %385 : vector<2x32xf32>
    %387 = arith.mulf %382, %386 : vector<2x32xf32>
    %388 = vector.extract_strided_slice %328 {offsets = [6, 0], sizes = [2, 128], strides = [1, 1]} : vector<16x128xf32> to vector<2x128xf32>
    %cst_65 = arith.constant dense<0.000000e+00> : vector<2x128xf32>
    %389 = tpu.matmul %387, %324, %cst_65 {dimension_numbers = #tpu.dot_dimension_numbers<[1], [0], [0], [1], [0, 0, 1, 1], [], []>} : vector<2x32xf32>, vector<32x128xf32>, vector<2x128xf32> -> vector<2x128xf32>
    %390 = arith.addf %388, %389 : vector<2x128xf32>
    %391 = vector.extract_strided_slice %390 {offsets = [0, 0], sizes = [2, 96], strides = [1, 1]} : vector<2x128xf32> to vector<2x96xf32>
    %392 = arith.negf %391 : vector<2x96xf32>
    %393 = math.exp %392 : vector<2x96xf32>
    %cst_66 = arith.constant 1.000000e+00 : f32
    %394 = vector.broadcast %cst_66 : f32 to vector<2x96xf32>
    %395 = arith.addf %394, %393 : vector<2x96xf32>
    %396 = arith.divf %394, %395 : vector<2x96xf32>
    %397 = vector.extract_strided_slice %390 {offsets = [0, 96], sizes = [2, 32], strides = [1, 1]} : vector<2x128xf32> to vector<2x32xf32>
    %398 = math.tanh %397 : vector<2x32xf32>
    %399 = vector.extract_strided_slice %396 {offsets = [0, 0], sizes = [2, 32], strides = [1, 1]} : vector<2x96xf32> to vector<2x32xf32>
    %400 = vector.extract_strided_slice %396 {offsets = [0, 32], sizes = [2, 32], strides = [1, 1]} : vector<2x96xf32> to vector<2x32xf32>
    %401 = vector.extract_strided_slice %396 {offsets = [0, 64], sizes = [2, 32], strides = [1, 1]} : vector<2x96xf32> to vector<2x32xf32>
    %402 = arith.mulf %400, %385 : vector<2x32xf32>
    %403 = arith.mulf %399, %398 : vector<2x32xf32>
    %404 = arith.addf %402, %403 : vector<2x32xf32>
    %405 = math.tanh %404 : vector<2x32xf32>
    %406 = arith.mulf %401, %405 : vector<2x32xf32>
    %407 = vector.extract_strided_slice %328 {offsets = [8, 0], sizes = [2, 128], strides = [1, 1]} : vector<16x128xf32> to vector<2x128xf32>
    %cst_67 = arith.constant dense<0.000000e+00> : vector<2x128xf32>
    %408 = tpu.matmul %406, %324, %cst_67 {dimension_numbers = #tpu.dot_dimension_numbers<[1], [0], [0], [1], [0, 0, 1, 1], [], []>} : vector<2x32xf32>, vector<32x128xf32>, vector<2x128xf32> -> vector<2x128xf32>
    %409 = arith.addf %407, %408 : vector<2x128xf32>
    %410 = vector.extract_strided_slice %409 {offsets = [0, 0], sizes = [2, 96], strides = [1, 1]} : vector<2x128xf32> to vector<2x96xf32>
    %411 = arith.negf %410 : vector<2x96xf32>
    %412 = math.exp %411 : vector<2x96xf32>
    %cst_68 = arith.constant 1.000000e+00 : f32
    %413 = vector.broadcast %cst_68 : f32 to vector<2x96xf32>
    %414 = arith.addf %413, %412 : vector<2x96xf32>
    %415 = arith.divf %413, %414 : vector<2x96xf32>
    %416 = vector.extract_strided_slice %409 {offsets = [0, 96], sizes = [2, 32], strides = [1, 1]} : vector<2x128xf32> to vector<2x32xf32>
    %417 = math.tanh %416 : vector<2x32xf32>
    %418 = vector.extract_strided_slice %415 {offsets = [0, 0], sizes = [2, 32], strides = [1, 1]} : vector<2x96xf32> to vector<2x32xf32>
    %419 = vector.extract_strided_slice %415 {offsets = [0, 32], sizes = [2, 32], strides = [1, 1]} : vector<2x96xf32> to vector<2x32xf32>
    %420 = vector.extract_strided_slice %415 {offsets = [0, 64], sizes = [2, 32], strides = [1, 1]} : vector<2x96xf32> to vector<2x32xf32>
    %421 = arith.mulf %419, %404 : vector<2x32xf32>
    %422 = arith.mulf %418, %417 : vector<2x32xf32>
    %423 = arith.addf %421, %422 : vector<2x32xf32>
    %424 = math.tanh %423 : vector<2x32xf32>
    %425 = arith.mulf %420, %424 : vector<2x32xf32>
    %426 = vector.extract_strided_slice %328 {offsets = [10, 0], sizes = [2, 128], strides = [1, 1]} : vector<16x128xf32> to vector<2x128xf32>
    %cst_69 = arith.constant dense<0.000000e+00> : vector<2x128xf32>
    %427 = tpu.matmul %425, %324, %cst_69 {dimension_numbers = #tpu.dot_dimension_numbers<[1], [0], [0], [1], [0, 0, 1, 1], [], []>} : vector<2x32xf32>, vector<32x128xf32>, vector<2x128xf32> -> vector<2x128xf32>
    %428 = arith.addf %426, %427 : vector<2x128xf32>
    %429 = vector.extract_strided_slice %428 {offsets = [0, 0], sizes = [2, 96], strides = [1, 1]} : vector<2x128xf32> to vector<2x96xf32>
    %430 = arith.negf %429 : vector<2x96xf32>
    %431 = math.exp %430 : vector<2x96xf32>
    %cst_70 = arith.constant 1.000000e+00 : f32
    %432 = vector.broadcast %cst_70 : f32 to vector<2x96xf32>
    %433 = arith.addf %432, %431 : vector<2x96xf32>
    %434 = arith.divf %432, %433 : vector<2x96xf32>
    %435 = vector.extract_strided_slice %428 {offsets = [0, 96], sizes = [2, 32], strides = [1, 1]} : vector<2x128xf32> to vector<2x32xf32>
    %436 = math.tanh %435 : vector<2x32xf32>
    %437 = vector.extract_strided_slice %434 {offsets = [0, 0], sizes = [2, 32], strides = [1, 1]} : vector<2x96xf32> to vector<2x32xf32>
    %438 = vector.extract_strided_slice %434 {offsets = [0, 32], sizes = [2, 32], strides = [1, 1]} : vector<2x96xf32> to vector<2x32xf32>
    %439 = vector.extract_strided_slice %434 {offsets = [0, 64], sizes = [2, 32], strides = [1, 1]} : vector<2x96xf32> to vector<2x32xf32>
    %440 = arith.mulf %438, %423 : vector<2x32xf32>
    %441 = arith.mulf %437, %436 : vector<2x32xf32>
    %442 = arith.addf %440, %441 : vector<2x32xf32>
    %443 = math.tanh %442 : vector<2x32xf32>
    %444 = arith.mulf %439, %443 : vector<2x32xf32>
    %445 = vector.extract_strided_slice %328 {offsets = [12, 0], sizes = [2, 128], strides = [1, 1]} : vector<16x128xf32> to vector<2x128xf32>
    %cst_71 = arith.constant dense<0.000000e+00> : vector<2x128xf32>
    %446 = tpu.matmul %444, %324, %cst_71 {dimension_numbers = #tpu.dot_dimension_numbers<[1], [0], [0], [1], [0, 0, 1, 1], [], []>} : vector<2x32xf32>, vector<32x128xf32>, vector<2x128xf32> -> vector<2x128xf32>
    %447 = arith.addf %445, %446 : vector<2x128xf32>
    %448 = vector.extract_strided_slice %447 {offsets = [0, 0], sizes = [2, 96], strides = [1, 1]} : vector<2x128xf32> to vector<2x96xf32>
    %449 = arith.negf %448 : vector<2x96xf32>
    %450 = math.exp %449 : vector<2x96xf32>
    %cst_72 = arith.constant 1.000000e+00 : f32
    %451 = vector.broadcast %cst_72 : f32 to vector<2x96xf32>
    %452 = arith.addf %451, %450 : vector<2x96xf32>
    %453 = arith.divf %451, %452 : vector<2x96xf32>
    %454 = vector.extract_strided_slice %447 {offsets = [0, 96], sizes = [2, 32], strides = [1, 1]} : vector<2x128xf32> to vector<2x32xf32>
    %455 = math.tanh %454 : vector<2x32xf32>
    %456 = vector.extract_strided_slice %453 {offsets = [0, 0], sizes = [2, 32], strides = [1, 1]} : vector<2x96xf32> to vector<2x32xf32>
    %457 = vector.extract_strided_slice %453 {offsets = [0, 32], sizes = [2, 32], strides = [1, 1]} : vector<2x96xf32> to vector<2x32xf32>
    %458 = vector.extract_strided_slice %453 {offsets = [0, 64], sizes = [2, 32], strides = [1, 1]} : vector<2x96xf32> to vector<2x32xf32>
    %459 = arith.mulf %457, %442 : vector<2x32xf32>
    %460 = arith.mulf %456, %455 : vector<2x32xf32>
    %461 = arith.addf %459, %460 : vector<2x32xf32>
    %462 = math.tanh %461 : vector<2x32xf32>
    %463 = arith.mulf %458, %462 : vector<2x32xf32>
    %464 = vector.extract_strided_slice %328 {offsets = [14, 0], sizes = [2, 128], strides = [1, 1]} : vector<16x128xf32> to vector<2x128xf32>
    %cst_73 = arith.constant dense<0.000000e+00> : vector<2x128xf32>
    %465 = tpu.matmul %463, %324, %cst_73 {dimension_numbers = #tpu.dot_dimension_numbers<[1], [0], [0], [1], [0, 0, 1, 1], [], []>} : vector<2x32xf32>, vector<32x128xf32>, vector<2x128xf32> -> vector<2x128xf32>
    %466 = arith.addf %464, %465 : vector<2x128xf32>
    %467 = vector.extract_strided_slice %466 {offsets = [0, 0], sizes = [2, 96], strides = [1, 1]} : vector<2x128xf32> to vector<2x96xf32>
    %468 = arith.negf %467 : vector<2x96xf32>
    %469 = math.exp %468 : vector<2x96xf32>
    %cst_74 = arith.constant 1.000000e+00 : f32
    %470 = vector.broadcast %cst_74 : f32 to vector<2x96xf32>
    %471 = arith.addf %470, %469 : vector<2x96xf32>
    %472 = arith.divf %470, %471 : vector<2x96xf32>
    %473 = vector.extract_strided_slice %466 {offsets = [0, 96], sizes = [2, 32], strides = [1, 1]} : vector<2x128xf32> to vector<2x32xf32>
    %474 = math.tanh %473 : vector<2x32xf32>
    %475 = vector.extract_strided_slice %472 {offsets = [0, 0], sizes = [2, 32], strides = [1, 1]} : vector<2x96xf32> to vector<2x32xf32>
    %476 = vector.extract_strided_slice %472 {offsets = [0, 32], sizes = [2, 32], strides = [1, 1]} : vector<2x96xf32> to vector<2x32xf32>
    %477 = vector.extract_strided_slice %472 {offsets = [0, 64], sizes = [2, 32], strides = [1, 1]} : vector<2x96xf32> to vector<2x32xf32>
    %478 = arith.mulf %476, %461 : vector<2x32xf32>
    %479 = arith.mulf %475, %474 : vector<2x32xf32>
    %480 = arith.addf %478, %479 : vector<2x32xf32>
    %481 = math.tanh %480 : vector<2x32xf32>
    %482 = arith.mulf %477, %481 : vector<2x32xf32>
    %c0_75 = arith.constant 0 : index
    %c0_76 = arith.constant 0 : index
    %483 = vector.load %arg10[%c0_75, %c0_76] : memref<32x4xf32, #tpu.memory_space<vmem>>, vector<32x4xf32>
    %cst_77 = arith.constant dense<0.000000e+00> : vector<2x4xf32>
    %484 = tpu.matmul %482, %483, %cst_77 {dimension_numbers = #tpu.dot_dimension_numbers<[1], [0], [0], [1], [0, 0, 1, 1], [], []>} : vector<2x32xf32>, vector<32x4xf32>, vector<2x4xf32> -> vector<2x4xf32>
    %c0_78 = arith.constant 0 : index
    %c0_79 = arith.constant 0 : index
    %485 = vector.load %arg11[%c0_78, %c0_79] : memref<1x4xf32, #tpu.memory_space<vmem>>, vector<1x4xf32>
    %486 = vector.broadcast %485 : vector<1x4xf32> to vector<2x4xf32>
    %487 = arith.addf %484, %486 : vector<2x4xf32>
    %c0_80 = arith.constant 0 : index
    %c0_81 = arith.constant 0 : index
    %488 = vector.load %arg12[%c0_80, %c0_81] : memref<2x4xf32, #tpu.memory_space<vmem>>, vector<2x4xf32>
    tpu.vector_store %arg12[%c0_80, %c0_81], %487 {strides = array<i32>} : memref<2x4xf32, #tpu.memory_space<vmem>>, vector<2x4xf32>,
    return
  }
}

</mosaic_0001>

<bundles_post_ra>
// kernel: tpu_custom_call.1
= control target key start
LH: loop header
LB: loop body
LE: loop exit
PB: predicated region body
PF: predicated region fallthrough
CT: control target
= control target key end

     0   :  { %17 = vsyncpa [#allocation3], 0  ;;  %s4582_s0 = inlined_call_operand.vmem [shape: f32[16,4], index: 0, kind: input, shape index: {}]   ;;  %s4583_s1 = inlined_call_operand.hbm [shape: f32[4,128], index: 1, kind: input, shape index: {}]   ;;  %s4584_s2 = inlined_call_operand.vmem [shape: f32[32,128], index: 2, kind: input, shape index: {}]   ;;  %s4585_s3 = inlined_call_operand.vmem [shape: f32[1,128], index: 3, kind: input, shape index: {}]   ;;  %s4586_s4 = inlined_call_operand.vmem [shape: f32[32,128], index: 4, kind: input, shape index: {}]   ;;  %s4587_s5 = inlined_call_operand.hbm [shape: f32[32,128], index: 5, kind: input, shape index: {}]   ;;  %s4588_s6 = inlined_call_operand.vmem [shape: f32[1,128], index: 6, kind: input, shape index: {}]   ;;  %s4589_s7 = inlined_call_operand.hbm [shape: f32[32,128], index: 7, kind: input, shape index: {}]   ;;  %s4590_s8 = inlined_call_operand.hbm [shape: f32[32,128], index: 8, kind: input, shape index: {}]   ;;  %s4591_s9 = inlined_call_operand.vmem [shape: f32[1,128], index: 9, kind: input, shape index: {}]   ;;  %s4592_s10 = inlined_call_operand.vmem [shape: f32[32,4], index: 10, kind: input, shape index: {}]   ;;  %s4593_s11 = inlined_call_operand.vmem [shape: f32[1,4], index: 11, kind: input, shape index: {}]   ;;  %s4594_s12 = inlined_call_operand.hbm [shape: f32[2,4], index: 12, kind: output, shape index: {}]  }
   0x1   :  { %18 = vsyncpa [#allocation6], 0 }
   0x2   :  { %19 = vsyncpa [#allocation9], 0 }
   0x3   :  { %20 = vsyncpa [#allocation4], 0  ;;  %s4023_s21 = smov [#allocation5]   ;;  %s3905_s25 = scalar_lea.hbm %s4587_s5, 512 }
   0x4   :  { %s44_s22 = sshll.u32 %s4023_s21, 4  ;;  %p3906_p0 = scmp.ne.s32.totalorder %s4587_s5, %s3905_s25  ;;  %s45_s22 = int_to_ptr.vmem [resolvable:$true] %s44_s22 }
   0x5   :  { %p3909_p1 = scmp.lt.u32.totalorder %s3905_s25, %s4587_s5 }
   0x7   :  { %p3911_p2 = pnand %p3909_p1, %p3906_p0 }
   0x9   :  { %3914 = shalt.err (!%p3911_p2)
}
   0xa   :  { %s3915_s30 = scalar_lea.vmem %s45_s22, 512  ;;  %p3920_p4 = scmp.lt.s32.totalorder %s45_s22, %s45_s22 }
   0xb   :  { %p3916_p3 = scmp.ne.s32.totalorder %s45_s22, %s3915_s30  ;;  %p3921_p5 = scmp.lt.s32.totalorder %s3915_s30, %s3915_s30 }
   0xd   :  { %p3922_p6 = por %p3921_p5, %p3920_p4 }
   0xf   :  { %p3923_p7 = pnand %p3922_p6, %p3916_p3 }
  0x11   :  { %3926 = shalt.err (!%p3923_p7)
}
  0x12   :  { %s4024_s13 = smov 128   ;;  %s4025_s14 = smov 8  }
  0x13   :  { %50 = dma.hbm_to_vmem [thread:$0]  %s4587_s5, 512, %s45_s22, [#allocation6], %s4024_s13, %s4024_s13, %s4025_s14  }
  0x14   :  { %s4026_s17 = smov [#allocation2]   ;;  %s4027_s19 = smov [#allocation7]  }
  0x15   :  { %s29_s18 = sshll.u32 %s4026_s17, 4  ;;  %s58_s20 = sshll.u32 %s4027_s19, 4  ;;  %s30_s18 = int_to_ptr.vmem [resolvable:$true] %s29_s18  ;;  %s59_s20 = int_to_ptr.vmem [resolvable:$true] %s58_s20 }
  0x16   :  { %s3927_s24 = scalar_lea.hbm %s4583_s1, 64 }
  0x17   :  { %p3928_p8 = scmp.ne.s32.totalorder %s4583_s1, %s3927_s24  ;;  %p3931_p9 = scmp.lt.u32.totalorder %s3927_s24, %s4583_s1 }
  0x19   :  { %p3933_p10 = pnand %p3931_p9, %p3928_p8 }
  0x1b   :  { %3936 = shalt.err (!%p3933_p10)
}
  0x1c   :  { %s3937_s5 = scalar_lea.vmem %s30_s18, 64  ;;  %p3942_p12 = scmp.lt.s32.totalorder %s30_s18, %s30_s18 }
  0x1d   :  { %p3938_p11 = scmp.ne.s32.totalorder %s30_s18, %s3937_s5  ;;  %p3943_p13 = scmp.lt.s32.totalorder %s3937_s5, %s3937_s5 }
  0x1f   :  { %p3944_p0 = por %p3943_p13, %p3942_p12 }
  0x21   :  { %p3945_p1 = pnand %p3944_p0, %p3938_p11 }
  0x23   :  { %3948 = shalt.err (!%p3945_p1)
}
  0x24   :  { %32 = dma.hbm_to_vmem [thread:$0]  %s4583_s1, 64, %s30_s18, [#allocation3]  }
  0x25   :  { %s3949_s16 = scalar_lea.hbm %s4589_s7, 512 }
  0x26   :  { %p3950_p2 = scmp.ne.s32.totalorder %s4589_s7, %s3949_s16  ;;  %p3953_p3 = scmp.lt.u32.totalorder %s3949_s16, %s4589_s7 }
  0x28   :  { %p3955_p4 = pnand %p3953_p3, %p3950_p2 }
  0x2a   :  { %3958 = shalt.err (!%p3955_p4)
}
  0x2b   :  { %s3959_s24 = scalar_lea.vmem %s59_s20, 512  ;;  %p3964_p6 = scmp.lt.s32.totalorder %s59_s20, %s59_s20 }
  0x2c   :  { %p3960_p5 = scmp.ne.s32.totalorder %s59_s20, %s3959_s24  ;;  %p3965_p7 = scmp.lt.s32.totalorder %s3959_s24, %s3959_s24 }
  0x2e   :  { %p3966_p8 = por %p3965_p7, %p3964_p6 }
  0x30   :  { %p3967_p9 = pnand %p3966_p8, %p3960_p5 }
  0x32   :  { %3970 = shalt.err (!%p3967_p9)
}
  0x33   :  { %64 = dma.hbm_to_vmem [thread:$0]  %s4589_s7, 512, %s59_s20, [#allocation6], %s4024_s13, %s4024_s13, %s4025_s14  }
  0x34   :  { %s4028_s25 = smov [#allocation8]   ;;  %s3971_s5 = scalar_lea.hbm %s4590_s8, 512 }
  0x35   :  { %s70_s26 = sshll.u32 %s4028_s25, 4  ;;  %p3972_p10 = scmp.ne.s32.totalorder %s4590_s8, %s3971_s5  ;;  %s71_s26 = int_to_ptr.vmem [resolvable:$true] %s70_s26 }
  0x36   :  { %p3975_p11 = scmp.lt.u32.totalorder %s3971_s5, %s4590_s8 }
  0x38   :  { %p3977_p12 = pnand %p3975_p11, %p3972_p10 }
  0x3a   :  { %3980 = shalt.err (!%p3977_p12)
}
  0x3b   :  { %s3981_s16 = scalar_lea.vmem %s71_s26, 512  ;;  %p3986_p0 = scmp.lt.s32.totalorder %s71_s26, %s71_s26 }
  0x3c   :  { %p3982_p13 = scmp.ne.s32.totalorder %s71_s26, %s3981_s16  ;;  %p3987_p1 = scmp.lt.s32.totalorder %s3981_s16, %s3981_s16 }
  0x3e   :  { %p3988_p2 = por %p3987_p1, %p3986_p0 }
  0x40   :  { %p3989_p3 = pnand %p3988_p2, %p3982_p13 }
  0x42   :  { %3992 = shalt.err (!%p3989_p3)
}
  0x43   :  { %76 = dma.hbm_to_vmem [thread:$0]  %s4590_s8, 512, %s71_s26, [#allocation9], %s4024_s13, %s4024_s13, %s4025_s14  }
  0x44   :  { %4015 = dma.done.wait [#allocation3], 64  }
  0x45   :  { %4016 = vsyncadd [#allocation3], 4294967232 }
  0x46   :  { %4017 = dma.done.wait [#allocation6], 1024  }
  0x47   :  { %4018 = vsyncadd [#allocation6], 4294966272 }
  0x48   :  { %4019 = dma.done.wait [#allocation9], 512  }
  0x49   :  { %4020 = vsyncadd [#allocation9], 4294966784  ;;  %v4029_v0 = vmov 0.0|0.0   ;;  %vm4030_vm0 = vmmov 0   ;;  %v4031_v1 = vmov 0.0   ;;  %vm116_vm1 = vcmask 1043456  }
  0x4a   :  { %3535 = vmatprep.subr.bf16.mxu1 %v4029_v0  ;;  %3246 = vmatprep.mubr.msk.f32.mxu1 %vm4030_vm0, %v4031_v1  ;;  %vm109_vm2 = vcmask 31744   ;;  %v98_v2 = vld [vmem:[%s4584_s2] sm:$0xff]  ;;  %v99_v3 = vld [vmem:[%s4584_s2 + $0x8] sm:$0xff]  ;;  %v97_v4 = vld [vmem:[#allocation2] sm:$0xf]  ;;  %s4032_s27 = smov 32  }
  0x4b   :  { %v4166_v5 = vpack.c.bf16 %v99_v3, %v98_v2  ;;  %3233 = vmatprep.subr.msk.mxu0 %vm116_vm1, %v97_v4  ;;  %v95_v6 = vld [vmem:[%s4582_s0] sm:$0xff]  ;;  %v96_v7 = vld [vmem:[%s4582_s0 + $0x8] sm:$0xff]  ;;  %v100_v8 = vld [vmem:[%s4584_s2 + $0x10] sm:$0xff]  ;;  %vm195_vm3 = vcmask 261120   ;;  %vm1038_vm4 = vcmask 1041408   ;;  %vm1041_vm5 = vcmask 1045504  }
  0x4c   :  { %3234 = vmatpush3.msk.msra.mxu0 %vm116_vm1, %v97_v4  ;;  %3235 = vmatprep.mubr.msk.f32.mxu0 %vm109_vm2, %v95_v6  ;;  %v101_v9 = vld [vmem:[%s4584_s2 + $0x18] sm:$0xff]  ;;  %v3036_v11 = vld [vmem:[%s4585_s3] ss:$0 sm:$0xff]  ;;  %s4033_s3 = smov 64   ;;  %vm3017_vm6 = vcmask 25600  }
  0x4d   :  { %3537 = vmatpush3.bf16.msra.mxu1 %v4166_v5  ;;  %3236 = vmatmul.mubr.msk.f32.vlgmr.msra.gmra.mrb[0].mxu0 %vm109_vm2, %v96_v7  ;;  %v4183_v10 = vpack.c.bf16 %v101_v9, %v100_v8 }
  0x4e   :  { %3538 = vmatprep.subr.bf16.mxu1 %v4029_v0  ;;  %3541 = vmatprep.subr.bf16.mxu0 %v4029_v0 }
  0x4f   :  { %3543 = vmatpush3.bf16.msra.mxu0 %v4166_v5  ;;  %3257 = vmatprep.mubr.msk.f32.mxu0 %vm4030_vm0, %v4031_v1 }
  0x50   :  { %3544 = vmatprep.subr.bf16.mxu0 %v4029_v0 }
  0x51   :  { %3540 = vmatpush3.bf16.msra.mxu1 %v4183_v10 }
  0x52   :  { %3547 = vmatprep.subr.bf16.mxu1 %v4029_v0 }
  0x53   :  { %3546 = vmatpush3.bf16.msra.mxu0 %v4183_v10 }
  0x54   :  { %3247 = vmatmul.mubr.f32.vlgmr.msra.gmra.mrb[0].mxu1 %v4031_v1  ;;  %3553 = vmatprep.subr.bf16.mxu0 %v4029_v0 }
  0x55   :  { %3549 = vmatpush3.bf16.msra.mxu1 %v4166_v5  ;;  %3268 = vmatprep.mubr.msk.f32.mxu1 %vm4030_vm0, %v4031_v1 }
  0x56   :  { %3550 = vmatprep.subr.bf16.mxu1 %v4029_v0 }
  0x59   :  { %3552 = vmatpush3.bf16.msra.mxu1 %v4183_v10 }
  0x5a   :  { %3559 = vmatprep.subr.bf16.mxu1 %v4029_v0 }
 0x120   :  { %v3237_v12 = vpop.f32.mrb[0].mxu0 }
 0x121   :  { %v4205_v13 = vadd.f32 %v3237_v12, %v3036_v11  ;;  %v186_v14 = vpop.f32.mrb[1].mxu0 }
 0x122   :  { %v4207_v15 = vadd.f32 %v3036_v11, %v186_v14 }
 0x127   :  { %v265_v16 = vpop.f32.mrb[0].mxu1 }
 0x128   :  { %v269_v17 = vadd.f32 %v265_v16, %v4207_v15  ;;  %v3248_v18 = vpop.f32.mrb[1].mxu1 }
 0x12a   :  { %3713 = vtanh.f32 %v269_v17  ;;  %v3040_v20 = vmul.f32 -1.442695, %v269_v17 }
 0x12c   :  { %3715 = vpow2.f32 %v3040_v20 }
 0x134   :  { %v3714_v19 = vpop.eup %3713 }
 0x135   :  { %279 = vrot.lane.b32.xlu0 %v3714_v19, %s4032_s27 }
 0x136   :  { %v3716_v21 = vpop.eup %3715 }
 0x137   :  { %v273_v22 = vadd.f32 1.0, %v3716_v21 }
 0x139   :  { %3717 = vrcp.f32 %v273_v22 }
 0x143   :  { %v3718_v23 = vpop.eup %3717 }
 0x144   :  { %v277_v26 = vmul.f32 0.0, %v3718_v23 }
 0x1a7   :  { %v280_v24 = vpop.permute.xlu0 %279 }
 0x1a8   :  { %v282_v25 = vmul.f32 %v3718_v23, %v280_v24 }
 0x1aa   :  { %284 = vrot.lane.b32.xlu0 %v282_v25, %s4032_s27 }
 0x21c   :  { %v285_v27 = vpop.permute.xlu0 %284 }
 0x21d   :  { %v287_v28 = vadd.f32 %v285_v27, %v277_v26 }
 0x21f   :  { %3719 = vtanh.f32 %v287_v28  ;;  %v381_v44 = vrot.slane %v287_v28, 6 }
 0x229   :  { %v3720_v29 = vpop.eup %3719 }
 0x22a   :  { %290 = vrot.lane.b32.xlu1 %v3720_v29, %s4032_s27 }
 0x29c   :  { %v291_v30 = vpop.permute.xlu1 %290 }
 0x29d   :  { %v4213_v31 = vmul.f32 %v3718_v23, %v291_v30 }
 0x29f   :  { %295 = vrot.lane.b32.xlu1 %v4213_v31, %s4033_s3 }
 0x311   :  { %v296_v32 = vpop.permute.xlu1 %295 }
 0x312   :  { %3258 = vmatmul.mubr.msk.f32.vlgmr.msra.gmra.mrb[2].mxu0 %vm195_vm3, %v296_v32 }
 0x313   :  { %3555 = vmatpush3.bf16.msra.mxu0 %v4166_v5  ;;  %3279 = vmatprep.mubr.msk.f32.mxu0 %vm4030_vm0, %v4031_v1 }
 0x314   :  { %3556 = vmatprep.subr.bf16.mxu0 %v4029_v0 }
 0x317   :  { %3558 = vmatpush3.bf16.msra.mxu0 %v4183_v10 }
 0x318   :  { %3565 = vmatprep.subr.bf16.mxu0 %v4029_v0 }
 0x3e5   :  { %v365_v33 = vpop.f32.mrb[2].mxu0 }
 0x3e6   :  { %v370_v34 = vrot.slane %v365_v33, 6  ;;  %v3259_v35 = vpop.f32.mrb[3].mxu0 }
 0x3e8   :  { %v372_v36 = vadd.f32 %v370_v34, %v4207_v15 }
 0x3ea   :  { %3721 = vtanh.f32 %v372_v36  ;;  %v3042_v38 = vmul.f32 -1.442695, %v372_v36 }
 0x3ec   :  { %3723 = vpow2.f32 %v3042_v38 }
 0x3f4   :  { %v3722_v37 = vpop.eup %3721 }
 0x3f5   :  { %385 = vrot.lane.b32.xlu0 %v3722_v37, %s4032_s27 }
 0x3f6   :  { %v3724_v39 = vpop.eup %3723 }
 0x3f7   :  { %v376_v40 = vadd.f32 1.0, %v3724_v39 }
 0x3f9   :  { %3725 = vrcp.f32 %v376_v40 }
 0x403   :  { %v3726_v41 = vpop.eup %3725 }
 0x404   :  { %v383_v45 = vmul.f32 %v3726_v41, %v381_v44 }
 0x467   :  { %v386_v42 = vpop.permute.xlu0 %385 }
 0x468   :  { %v388_v43 = vmul.f32 %v3726_v41, %v386_v42 }
 0x46a   :  { %390 = vrot.lane.b32.xlu1 %v388_v43, %s4032_s27 }
 0x4dc   :  { %v391_v46 = vpop.permute.xlu1 %390 }
 0x4dd   :  { %v393_v47 = vadd.f32 %v391_v46, %v383_v45 }
 0x4df   :  { %3727 = vtanh.f32 %v393_v47  ;;  %v488_v2 = vrot.slane %v393_v47, 6 }
 0x4e9   :  { %v3728_v48 = vpop.eup %3727 }
 0x4ea   :  { %396 = vrot.lane.b32.xlu0 %v3728_v48, %s4032_s27 }
 0x55c   :  { %v397_v49 = vpop.permute.xlu0 %396 }
 0x55d   :  { %v399_v50 = vmul.f32 %v3726_v41, %v397_v49 }
 0x55f   :  { %v401_v51 = vrot.slane %v399_v50, 2  ;;  %v1039_v11 = vsel %vm1038_vm4, %v4213_v31, %v399_v50 }
 0x561   :  { %402 = vrot.lane.b32.xlu1 %v401_v51, %s4033_s3 }
 0x5d3   :  { %v403_v52 = vpop.permute.xlu1 %402 }
 0x5d4   :  { %3269 = vmatmul.mubr.msk.f32.vlgmr.msra.gmra.mrb[2].mxu1 %vm195_vm3, %v403_v52 }
 0x5d5   :  { %3561 = vmatpush3.bf16.msra.mxu1 %v4166_v5  ;;  %3290 = vmatprep.mubr.msk.f32.mxu1 %vm4030_vm0, %v4031_v1 }
 0x5d6   :  { %3562 = vmatprep.subr.bf16.mxu1 %v4029_v0 }
 0x5d9   :  { %3564 = vmatpush3.bf16.msra.mxu1 %v4183_v10 }
 0x5da   :  { %3571 = vmatprep.subr.bf16.mxu1 %v4029_v0 }
 0x6a7   :  { %v472_v53 = vpop.f32.mrb[2].mxu1 }
 0x6a8   :  { %v477_v54 = vrot.slane %v472_v53, 4  ;;  %v3270_v55 = vpop.f32.mrb[3].mxu1 }
 0x6aa   :  { %v479_v56 = vadd.f32 %v477_v54, %v4207_v15 }
 0x6ac   :  { %3729 = vtanh.f32 %v479_v56  ;;  %v3044_v58 = vmul.f32 -1.442695, %v479_v56 }
 0x6ae   :  { %3731 = vpow2.f32 %v3044_v58 }
 0x6b6   :  { %v3730_v57 = vpop.eup %3729 }
 0x6b7   :  { %492 = vrot.lane.b32.xlu0 %v3730_v57, %s4032_s27 }
 0x6b8   :  { %v3732_v59 = vpop.eup %3731 }
 0x6b9   :  { %v483_v60 = vadd.f32 1.0, %v3732_v59 }
 0x6bb   :  { %3733 = vrcp.f32 %v483_v60 }
 0x6c5   :  { %v3734_v61 = vpop.eup %3733 }
 0x6c6   :  { %v490_v3 = vmul.f32 %v3734_v61, %v488_v2 }
 0x729   :  { %v493_v62 = vpop.permute.xlu0 %492 }
 0x72a   :  { %v495_v63 = vmul.f32 %v3734_v61, %v493_v62 }
 0x72c   :  { %497 = vrot.lane.b32.xlu1 %v495_v63, %s4032_s27 }
 0x79e   :  { %v498_v4 = vpop.permute.xlu1 %497 }
 0x79f   :  { %v500_v6 = vadd.f32 %v498_v4, %v490_v3 }
 0x7a1   :  { %3735 = vtanh.f32 %v500_v6  ;;  %v595_v28 = vrot.slane %v500_v6, 6 }
 0x7ab   :  { %v3736_v7 = vpop.eup %3735 }
 0x7ac   :  { %503 = vrot.lane.b32.xlu0 %v3736_v7, %s4032_s27 }
 0x81e   :  { %v504_v8 = vpop.permute.xlu0 %503 }
 0x81f   :  { %v506_v9 = vmul.f32 %v3734_v61, %v504_v8 }
 0x821   :  { %v508_v12 = vrot.slane %v506_v9, 4  ;;  %v1040_v14 = vsel %vm116_vm1, %v1039_v11, %v506_v9 }
 0x823   :  { %509 = vrot.lane.b32.xlu1 %v508_v12, %s4033_s3 }
 0x895   :  { %v510_v16 = vpop.permute.xlu1 %509 }
 0x896   :  { %3280 = vmatmul.mubr.msk.f32.vlgmr.msra.gmra.mrb[4].mxu0 %vm195_vm3, %v510_v16 }
 0x897   :  { %3567 = vmatpush3.bf16.msra.mxu0 %v4166_v5  ;;  %3301 = vmatprep.mubr.msk.f32.mxu0 %vm4030_vm0, %v4031_v1 }
 0x898   :  { %3568 = vmatprep.subr.bf16.mxu0 %v4029_v0 }
 0x89b   :  { %3570 = vmatpush3.bf16.msra.mxu0 %v4183_v10 }
 0x89c   :  { %3577 = vmatprep.subr.bf16.mxu0 %v4029_v0 }
 0x969   :  { %v579_v17 = vpop.f32.mrb[4].mxu0 }
 0x96a   :  { %v584_v18 = vrot.slane %v579_v17, 2  ;;  %v3281_v19 = vpop.f32.mrb[5].mxu0 }
 0x96c   :  { %v586_v20 = vadd.f32 %v584_v18, %v4207_v15 }
 0x96e   :  { %3737 = vtanh.f32 %v586_v20  ;;  %v3046_v22 = vmul.f32 -1.442695, %v586_v20 }
 0x970   :  { %3739 = vpow2.f32 %v3046_v22 }
 0x978   :  { %v3738_v21 = vpop.eup %3737 }
 0x979   :  { %599 = vrot.lane.b32.xlu0 %v3738_v21, %s4032_s27 }
 0x97a   :  { %v3740_v23 = vpop.eup %3739 }
 0x97b   :  { %v590_v24 = vadd.f32 1.0, %v3740_v23 }
 0x97d   :  { %3741 = vrcp.f32 %v590_v24 }
 0x987   :  { %v3742_v25 = vpop.eup %3741 }
 0x988   :  { %v597_v29 = vmul.f32 %v3742_v25, %v595_v28 }
 0x9eb   :  { %v600_v26 = vpop.permute.xlu0 %599 }
 0x9ec   :  { %v602_v27 = vmul.f32 %v3742_v25, %v600_v26 }
 0x9ee   :  { %604 = vrot.lane.b32.xlu1 %v602_v27, %s4032_s27 }
 0xa60   :  { %v605_v30 = vpop.permute.xlu1 %604 }
 0xa61   :  { %v607_v31 = vadd.f32 %v605_v30, %v597_v29 }
 0xa63   :  { %3743 = vtanh.f32 %v607_v31  ;;  %v699_v47 = vrot.slane %v607_v31, 6 }
 0xa6d   :  { %v3744_v15 = vpop.eup %3743 }
 0xa6e   :  { %610 = vrot.lane.b32.xlu0 %v3744_v15, %s4032_s27 }
 0xae0   :  { %v611_v32 = vpop.permute.xlu0 %610 }
 0xae1   :  { %v613_v33 = vmul.f32 %v3742_v25, %v611_v32 }
 0xae3   :  { %v615_v34 = vrot.slane %v613_v33, 6  ;;  %v4256_v35 = vsel %vm1041_vm5, %v1040_v14, %v613_v33 }
 0xae5   :  { %616 = vrot.lane.b32.xlu1 %v615_v34, %s4033_s3 }
 0xb57   :  { %v617_v36 = vpop.permute.xlu1 %616 }
 0xb58   :  { %3291 = vmatmul.mubr.msk.f32.vlgmr.msra.gmra.mrb[4].mxu1 %vm195_vm3, %v617_v36 }
 0xb59   :  { %3573 = vmatpush3.bf16.msra.mxu1 %v4166_v5  ;;  %3312 = vmatprep.mubr.msk.f32.mxu1 %vm4030_vm0, %v4031_v1 }
 0xb5a   :  { %3574 = vmatprep.subr.bf16.mxu1 %v4029_v0 }
 0xb5d   :  { %3576 = vmatpush3.bf16.msra.mxu1 %v4183_v10 }
 0xc2b   :  { %v686_v37 = vpop.f32.mrb[4].mxu1 }
 0xc2c   :  { %v690_v38 = vadd.f32 %v686_v37, %v4205_v13  ;;  %v3292_v39 = vpop.f32.mrb[5].mxu1 }
 0xc2e   :  { %3745 = vtanh.f32 %v690_v38  ;;  %v3048_v41 = vmul.f32 -1.442695, %v690_v38 }
 0xc30   :  { %3747 = vpow2.f32 %v3048_v41 }
 0xc38   :  { %v3746_v40 = vpop.eup %3745 }
 0xc39   :  { %703 = vrot.lane.b32.xlu0 %v3746_v40, %s4032_s27 }
 0xc3a   :  { %v3748_v42 = vpop.eup %3747 }
 0xc3b   :  { %v694_v43 = vadd.f32 1.0, %v3748_v42 }
 0xc3d   :  { %3749 = vrcp.f32 %v694_v43 }
 0xc47   :  { %v3750_v44 = vpop.eup %3749 }
 0xc48   :  { %v701_v48 = vmul.f32 %v3750_v44, %v699_v47 }
 0xcab   :  { %v704_v45 = vpop.permute.xlu0 %703 }
 0xcac   :  { %v706_v46 = vmul.f32 %v3750_v44, %v704_v45 }
 0xcae   :  { %708 = vrot.lane.b32.xlu1 %v706_v46, %s4032_s27 }
 0xd20   :  { %v709_v49 = vpop.permute.xlu1 %708 }
 0xd21   :  { %v711_v50 = vadd.f32 %v709_v49, %v701_v48 }
 0xd23   :  { %3751 = vtanh.f32 %v711_v50 }
 0xd2d   :  { %v3752_v51 = vpop.eup %3751 }
 0xd2e   :  { %714 = vrot.lane.b32.xlu0 %v3752_v51, %s4032_s27 }
 0xda0   :  { %v715_v52 = vpop.permute.xlu0 %714 }
 0xda1   :  { %v4269_v53 = vmul.f32 %v3750_v44, %v715_v52  ;;  %v1046_v52 = vld [vmem:[%s4586_s4] sm:$0xff] }
 0xda3   :  { %719 = vrot.lane.b32.xlu1 %v4269_v53, %s4033_s3 }
 0xe15   :  { %v720_v54 = vpop.permute.xlu1 %719 }
 0xe16   :  { %3302 = vmatmul.mubr.msk.f32.vlgmr.msra.gmra.mrb[6].mxu0 %vm195_vm3, %v720_v54  ;;  %v1050_v54 = vld [vmem:[#allocation5] sm:$0xff] }
 0xe17   :  { %3579 = vmatpush3.bf16.msra.mxu0 %v4166_v5  ;;  %3323 = vmatprep.mubr.msk.f32.mxu0 %vm4030_vm0, %v4031_v1 }
 0xe18   :  { %3580 = vmatprep.subr.bf16.mxu0 %v4029_v0 }
 0xe1b   :  { %3582 = vmatpush3.bf16.msra.mxu0 %v4183_v10  ;;  %v805_v10 = vrot.slane %v711_v50, 6 }
 0xe1c   :  { %3591 = vmatprep.subr.bf16.mxu0 %v4029_v0 }
 0xee9   :  { %v789_v55 = vpop.f32.mrb[6].mxu0 }
 0xeea   :  { %v794_v56 = vrot.slane %v789_v55, 6  ;;  %v3303_v57 = vpop.f32.mrb[7].mxu0 }
 0xeeb   :  { %v1049_v57 = vld [vmem:[%s4586_s4 + $0x18] sm:$0xff] }
 0xeec   :  { %v796_v58 = vadd.f32 %v794_v56, %v4205_v13  ;;  %v1051_v56 = vld [vmem:[#allocation5 + $0x8] sm:$0xff] }
 0xeee   :  { %3753 = vtanh.f32 %v796_v58  ;;  %v3050_v60 = vmul.f32 -1.442695, %v796_v58  ;;  %v4315_v58 = vpack.c.bf16 %v1051_v56, %v1050_v54 }
 0xef0   :  { %3755 = vpow2.f32 %v3050_v60  ;;  %v1052_v60 = vld [vmem:[#allocation5 + $0x10] sm:$0xff] }
 0xef8   :  { %v3754_v59 = vpop.eup %3753 }
 0xef9   :  { %809 = vrot.lane.b32.xlu0 %v3754_v59, %s4032_s27 }
 0xefa   :  { %v3756_v5 = vpop.eup %3755 }
 0xefb   :  { %v800_v61 = vadd.f32 1.0, %v3756_v5  ;;  %v1053_v5 = vld [vmem:[#allocation5 + $0x18] sm:$0xff] }
 0xefd   :  { %3757 = vrcp.f32 %v800_v61  ;;  %v4318_v61 = vpack.c.bf16 %v1053_v5, %v1052_v60 }
 0xf07   :  { %v3758_v62 = vpop.eup %3757 }
 0xf08   :  { %v807_v3 = vmul.f32 %v3758_v62, %v805_v10 }
 0xf6b   :  { %v810_v63 = vpop.permute.xlu0 %809 }
 0xf6c   :  { %v812_v2 = vmul.f32 %v3758_v62, %v810_v63 }
 0xf6e   :  { %814 = vrot.lane.b32.xlu1 %v812_v2, %s4032_s27 }
 0xfe0   :  { %v815_v4 = vpop.permute.xlu1 %814 }
 0xfe1   :  { %v817_v6 = vadd.f32 %v815_v4, %v807_v3 }
 0xfe3   :  { %3759 = vtanh.f32 %v817_v6  ;;  %v912_v26 = vrot.slane %v817_v6, 6 }
 0xfed   :  { %v3760_v7 = vpop.eup %3759 }
 0xfee   :  { %820 = vrot.lane.b32.xlu0 %v3760_v7, %s4032_s27  ;;  %v3055_v7 = vld [vmem:[%s4588_s6] ss:$0 sm:$0xff] }
0x1060   :  { %v821_v8 = vpop.permute.xlu0 %820 }
0x1061   :  { %v823_v9 = vmul.f32 %v3758_v62, %v821_v8 }
0x1063   :  { %v825_v11 = vrot.slane %v823_v9, 2  ;;  %v1043_v32 = vsel %vm1038_vm4, %v4269_v53, %v823_v9  ;;  %v1047_v53 = vld [vmem:[%s4586_s4 + $0x8] sm:$0xff] }
0x1064   :  { %v3583_v55 = vpack.c.bf16 %v1047_v53, %v1046_v52 }
0x1065   :  { %826 = vrot.lane.b32.xlu1 %v825_v11, %s4033_s3 }
0x1066   :  { %3584 = vmatprep.subr.bf16.mxu1 %v3583_v55 }
0x10d7   :  { %v827_v12 = vpop.permute.xlu1 %826 }
0x10d8   :  { %3313 = vmatmul.mubr.msk.f32.vlgmr.msra.gmra.mrb[6].mxu1 %vm195_vm3, %v827_v12 }
0x10d9   :  { %3586 = vmatpush3.bf16.msra.mxu1 %v3583_v55 }
0x11ab   :  { %v896_v14 = vpop.f32.mrb[6].mxu1 }
0x11ac   :  { %v901_v16 = vrot.slane %v896_v14, 4  ;;  %v3314_v17 = vpop.f32.mrb[7].mxu1 }
0x11ae   :  { %v903_v18 = vadd.f32 %v901_v16, %v4205_v13 }
0x11b0   :  { %3761 = vtanh.f32 %v903_v18  ;;  %v3052_v20 = vmul.f32 -1.442695, %v903_v18 }
0x11b2   :  { %3763 = vpow2.f32 %v3052_v20 }
0x11ba   :  { %v3762_v19 = vpop.eup %3761 }
0x11bb   :  { %916 = vrot.lane.b32.xlu0 %v3762_v19, %s4032_s27 }
0x11bc   :  { %v3764_v21 = vpop.eup %3763 }
0x11bd   :  { %v907_v22 = vadd.f32 1.0, %v3764_v21 }
0x11bf   :  { %3765 = vrcp.f32 %v907_v22 }
0x11c9   :  { %v3766_v23 = vpop.eup %3765 }
0x11ca   :  { %v914_v27 = vmul.f32 %v3766_v23, %v912_v26 }
0x122d   :  { %v917_v24 = vpop.permute.xlu0 %916 }
0x122e   :  { %v919_v25 = vmul.f32 %v3766_v23, %v917_v24 }
0x1230   :  { %921 = vrot.lane.b32.xlu1 %v919_v25, %s4032_s27 }
0x12a2   :  { %v922_v28 = vpop.permute.xlu1 %921 }
0x12a3   :  { %v924_v29 = vadd.f32 %v922_v28, %v914_v27 }
0x12a5   :  { %3767 = vtanh.f32 %v924_v29  ;;  %v1019_v48 = vrot.slane %v924_v29, 6 }
0x12af   :  { %v3768_v30 = vpop.eup %3767 }
0x12b0   :  { %927 = vrot.lane.b32.xlu0 %v3768_v30, %s4032_s27 }
0x1322   :  { %v928_v31 = vpop.permute.xlu0 %927 }
0x1323   :  { %v930_v15 = vmul.f32 %v3766_v23, %v928_v31 }
0x1325   :  { %v932_v33 = vrot.slane %v930_v15, 4  ;;  %v1044_v34 = vsel %vm116_vm1, %v1043_v32, %v930_v15 }
0x1327   :  { %933 = vrot.lane.b32.xlu1 %v932_v33, %s4033_s3 }
0x1399   :  { %v934_v36 = vpop.permute.xlu1 %933 }
0x139a   :  { %3324 = vmatmul.mubr.msk.f32.vlgmr.msra.gmra.mrb[8].mxu0 %vm195_vm3, %v934_v36 }
0x139b   :  { %3345 = vmatprep.mubr.msk.f32.mxu0 %vm4030_vm0, %v4031_v1  ;;  %3593 = vmatpush3.bf16.msra.mxu0 %v4315_v58 }
0x139c   :  { %3594 = vmatprep.subr.bf16.mxu0 %v4029_v0 }
0x139f   :  { %3596 = vmatpush3.bf16.msra.mxu0 %v4318_v61 }
0x13a0   :  { %3603 = vmatprep.subr.bf16.mxu0 %v4029_v0 }
0x13a2   :  { %3346 = vmatmul.mubr.f32.vlgmr.msra.gmra.mrb[10].mxu0 %v4031_v1 }
0x13a3   :  { %3605 = vmatpush3.bf16.msra.mxu0 %v4315_v58  ;;  %3367 = vmatprep.mubr.msk.f32.mxu0 %vm4030_vm0, %v4031_v1 }
0x13a4   :  { %3606 = vmatprep.subr.bf16.mxu0 %v4029_v0 }
0x13a7   :  { %3608 = vmatpush3.bf16.msra.mxu0 %v4318_v61 }
0x13a8   :  { %3615 = vmatprep.subr.bf16.mxu0 %v4029_v0 }
0x146d   :  { %v1003_v37 = vpop.f32.mrb[8].mxu0 }
0x146e   :  { %v1008_v38 = vrot.slane %v1003_v37, 2  ;;  %v3325_v39 = vpop.f32.mrb[9].mxu0 }
0x1470   :  { %v1010_v40 = vadd.f32 %v1008_v38, %v4205_v13 }
0x1472   :  { %3769 = vtanh.f32 %v1010_v40  ;;  %v3054_v42 = vmul.f32 -1.442695, %v1010_v40 }
0x1474   :  { %3771 = vpow2.f32 %v3054_v42 }
0x1475   :  { %v1212_v4 = vpop.f32.mrb[10].mxu0 }
0x1476   :  { %v3347_v6 = vpop.f32.mrb[11].mxu0 }
0x147c   :  { %v3770_v41 = vpop.eup %3769 }
0x147d   :  { %1023 = vrot.lane.b32.xlu0 %v3770_v41, %s4032_s27 }
0x147e   :  { %v3772_v43 = vpop.eup %3771 }
0x147f   :  { %v1014_v44 = vadd.f32 1.0, %v3772_v43 }
0x1481   :  { %3773 = vrcp.f32 %v1014_v44 }
0x148b   :  { %v3774_v45 = vpop.eup %3773 }
0x148c   :  { %v1021_v49 = vmul.f32 %v3774_v45, %v1019_v48 }
0x14ef   :  { %v1024_v46 = vpop.permute.xlu0 %1023 }
0x14f0   :  { %v1026_v47 = vmul.f32 %v3774_v45, %v1024_v46 }
0x14f2   :  { %1028 = vrot.lane.b32.xlu1 %v1026_v47, %s4032_s27 }
0x14f6   :  { %1063 = vrot.lane.b32.xlu1 %v4256_v35, %s4033_s3  ;;  %v1048_v35 = vld [vmem:[%s4586_s4 + $0x10] sm:$0xff] }
0x14f7   :  { %v3587_v59 = vpack.c.bf16 %v1049_v57, %v1048_v35 }
0x14f9   :  { %3588 = vmatprep.subr.bf16.mxu1 %v3587_v59 }
0x14fa   :  { %3590 = vmatpush3.bf16.msra.mxu1 %v3587_v59 }
0x14fb   :  { %3597 = vmatprep.subr.bf16.mxu1 %v4029_v0 }
0x1564   :  { %v1029_v13 = vpop.permute.xlu1 %1028 }
0x1565   :  { %v1031_v50 = vadd.f32 %v1029_v13, %v1021_v49 }
0x1567   :  { %3775 = vtanh.f32 %v1031_v50 }
0x1568   :  { %v1064_v51 = vpop.permute.xlu1 %1063 }
0x1569   :  { %3334 = vmatprep.mubr.msk.f32.mxu1 %vm195_vm3, %v1064_v51 }
0x1571   :  { %v3776_v62 = vpop.eup %3775 }
0x1572   :  { %1034 = vrot.lane.b32.xlu0 %v3776_v62, %s4032_s27 }
0x15e4   :  { %v1035_v63 = vpop.permute.xlu0 %1034 }
0x15e5   :  { %v1037_v2 = vmul.f32 %v3774_v45, %v1035_v63 }
0x15e7   :  { %v1045_v10 = vsel %vm1041_vm5, %v1044_v34, %v1037_v2 }
0x15e8   :  { %1065 = vrot.lane.b32.xlu0 %v1045_v10, %s4033_s3 }
0x165a   :  { %v1066_v3 = vpop.permute.xlu0 %1065 }
0x165b   :  { %3335 = vmatmul.mubr.msk.f32.vlgmr.msra.gmra.mrb[8].mxu1 %vm195_vm3, %v1066_v3 }
0x165c   :  { %3599 = vmatpush3.bf16.msra.mxu1 %v4315_v58  ;;  %3356 = vmatprep.mubr.msk.f32.mxu1 %vm4030_vm0, %v4031_v1 }
0x165d   :  { %3600 = vmatprep.subr.bf16.mxu1 %v4029_v0 }
0x1660   :  { %3602 = vmatpush3.bf16.msra.mxu1 %v4318_v61 }
0x1661   :  { %3609 = vmatprep.subr.bf16.mxu1 %v4029_v0 }
0x172e   :  { %v3336_v8 = vpop.f32.mrb[8].mxu1 }
0x172f   :  { %v4344_v9 = vadd.f32 %v3336_v8, %v3055_v7  ;;  %v1137_v11 = vpop.f32.mrb[9].mxu1 }
0x1730   :  { %v4346_v12 = vadd.f32 %v3055_v7, %v1137_v11 }
0x1732   :  { %v1216_v14 = vadd.f32 %v1212_v4, %v4346_v12 }
0x1734   :  { %3777 = vtanh.f32 %v1216_v14  ;;  %v3058_v17 = vmul.f32 -1.442695, %v1216_v14 }
0x1736   :  { %3779 = vpow2.f32 %v3058_v17 }
0x173e   :  { %v3778_v16 = vpop.eup %3777 }
0x173f   :  { %1226 = vrot.lane.b32.xlu1 %v3778_v16, %s4032_s27 }
0x1740   :  { %v3780_v18 = vpop.eup %3779 }
0x1741   :  { %v1220_v19 = vadd.f32 1.0, %v3780_v18 }
0x1743   :  { %3781 = vrcp.f32 %v1220_v19 }
0x174d   :  { %v3782_v20 = vpop.eup %3781 }
0x174e   :  { %v1224_v23 = vmul.f32 0.0, %v3782_v20 }
0x17b1   :  { %v1227_v21 = vpop.permute.xlu1 %1226 }
0x17b2   :  { %v1229_v22 = vmul.f32 %v3782_v20, %v1227_v21 }
0x17b4   :  { %1231 = vrot.lane.b32.xlu0 %v1229_v22, %s4032_s27 }
0x1826   :  { %v1232_v24 = vpop.permute.xlu0 %1231 }
0x1827   :  { %v1234_v25 = vadd.f32 %v1232_v24, %v1224_v23 }
0x1829   :  { %3783 = vtanh.f32 %v1234_v25  ;;  %v1328_v41 = vrot.slane %v1234_v25, 6 }
0x1833   :  { %v3784_v26 = vpop.eup %3783 }
0x1834   :  { %1237 = vrot.lane.b32.xlu1 %v3784_v26, %s4032_s27 }
0x18a6   :  { %v1238_v27 = vpop.permute.xlu1 %1237 }
0x18a7   :  { %v4352_v28 = vmul.f32 %v3782_v20, %v1238_v27 }
0x18a9   :  { %1242 = vrot.lane.b32.xlu0 %v4352_v28, %s4033_s3 }
0x191b   :  { %v1243_v29 = vpop.permute.xlu0 %1242 }
0x191c   :  { %3357 = vmatmul.mubr.msk.f32.vlgmr.msra.gmra.mrb[10].mxu1 %vm195_vm3, %v1243_v29 }
0x191d   :  { %3611 = vmatpush3.bf16.msra.mxu1 %v4315_v58  ;;  %3378 = vmatprep.mubr.msk.f32.mxu1 %vm4030_vm0, %v4031_v1 }
0x191e   :  { %3612 = vmatprep.subr.bf16.mxu1 %v4029_v0 }
0x1921   :  { %3614 = vmatpush3.bf16.msra.mxu1 %v4318_v61 }
0x1922   :  { %3621 = vmatprep.subr.bf16.mxu1 %v4029_v0 }
0x19ef   :  { %v1312_v30 = vpop.f32.mrb[10].mxu1 }
0x19f0   :  { %v1317_v31 = vrot.slane %v1312_v30, 6  ;;  %v3358_v15 = vpop.f32.mrb[11].mxu1 }
0x19f2   :  { %v1319_v32 = vadd.f32 %v1317_v31, %v4346_v12 }
0x19f4   :  { %3785 = vtanh.f32 %v1319_v32  ;;  %v3060_v34 = vmul.f32 -1.442695, %v1319_v32 }
0x19f6   :  { %3787 = vpow2.f32 %v3060_v34 }
0x19fe   :  { %v3786_v33 = vpop.eup %3785 }
0x19ff   :  { %1332 = vrot.lane.b32.xlu1 %v3786_v33, %s4032_s27 }
0x1a00   :  { %v3788_v36 = vpop.eup %3787 }
0x1a01   :  { %v1323_v37 = vadd.f32 1.0, %v3788_v36 }
0x1a03   :  { %3789 = vrcp.f32 %v1323_v37 }
0x1a0d   :  { %v3790_v38 = vpop.eup %3789 }
0x1a0e   :  { %v1330_v42 = vmul.f32 %v3790_v38, %v1328_v41 }
0x1a71   :  { %v1333_v39 = vpop.permute.xlu1 %1332 }
0x1a72   :  { %v1335_v40 = vmul.f32 %v3790_v38, %v1333_v39 }
0x1a74   :  { %1337 = vrot.lane.b32.xlu0 %v1335_v40, %s4032_s27 }
0x1ae6   :  { %v1338_v43 = vpop.permute.xlu0 %1337 }
0x1ae7   :  { %v1340_v44 = vadd.f32 %v1338_v43, %v1330_v42 }
0x1ae9   :  { %3791 = vtanh.f32 %v1340_v44  ;;  %v1435_v60 = vrot.slane %v1340_v44, 6 }
0x1af3   :  { %v3792_v45 = vpop.eup %3791 }
0x1af4   :  { %1343 = vrot.lane.b32.xlu1 %v3792_v45, %s4032_s27 }
0x1b66   :  { %v1344_v46 = vpop.permute.xlu1 %1343 }
0x1b67   :  { %v1346_v47 = vmul.f32 %v3790_v38, %v1344_v46 }
0x1b69   :  { %v1348_v48 = vrot.slane %v1346_v47, 2  ;;  %v1985_v4 = vsel %vm1038_vm4, %v4352_v28, %v1346_v47 }
0x1b6b   :  { %1349 = vrot.lane.b32.xlu0 %v1348_v48, %s4033_s3 }
0x1bdd   :  { %v1350_v49 = vpop.permute.xlu0 %1349 }
0x1bde   :  { %3368 = vmatmul.mubr.msk.f32.vlgmr.msra.gmra.mrb[12].mxu0 %vm195_vm3, %v1350_v49 }
0x1bdf   :  { %3617 = vmatpush3.bf16.msra.mxu0 %v4315_v58  ;;  %3389 = vmatprep.mubr.msk.f32.mxu0 %vm4030_vm0, %v4031_v1 }
0x1be0   :  { %3618 = vmatprep.subr.bf16.mxu0 %v4029_v0 }
0x1be3   :  { %3620 = vmatpush3.bf16.msra.mxu0 %v4318_v61 }
0x1be4   :  { %3627 = vmatprep.subr.bf16.mxu0 %v4029_v0 }
0x1cb1   :  { %v1419_v13 = vpop.f32.mrb[12].mxu0 }
0x1cb2   :  { %v1424_v50 = vrot.slane %v1419_v13, 4  ;;  %v3369_v51 = vpop.f32.mrb[13].mxu0 }
0x1cb4   :  { %v1426_v52 = vadd.f32 %v1424_v50, %v4346_v12 }
0x1cb6   :  { %3793 = vtanh.f32 %v1426_v52  ;;  %v3062_v54 = vmul.f32 -1.442695, %v1426_v52 }
0x1cb8   :  { %3795 = vpow2.f32 %v3062_v54 }
0x1cc0   :  { %v3794_v53 = vpop.eup %3793 }
0x1cc1   :  { %1439 = vrot.lane.b32.xlu1 %v3794_v53, %s4032_s27 }
0x1cc2   :  { %v3796_v55 = vpop.eup %3795 }
0x1cc3   :  { %v1430_v56 = vadd.f32 1.0, %v3796_v55 }
0x1cc5   :  { %3797 = vrcp.f32 %v1430_v56 }
0x1ccf   :  { %v3798_v35 = vpop.eup %3797 }
0x1cd0   :  { %v1437_v5 = vmul.f32 %v3798_v35, %v1435_v60 }
0x1d33   :  { %v1440_v57 = vpop.permute.xlu1 %1439 }
0x1d34   :  { %v1442_v59 = vmul.f32 %v3798_v35, %v1440_v57 }
0x1d36   :  { %1444 = vrot.lane.b32.xlu0 %v1442_v59, %s4032_s27 }
0x1da8   :  { %v1445_v62 = vpop.permute.xlu0 %1444 }
0x1da9   :  { %v1447_v63 = vadd.f32 %v1445_v62, %v1437_v5 }
0x1dab   :  { %3799 = vtanh.f32 %v1447_v63  ;;  %v1542_v25 = vrot.slane %v1447_v63, 6 }
0x1db5   :  { %v3800_v2 = vpop.eup %3799 }
0x1db6   :  { %1450 = vrot.lane.b32.xlu1 %v3800_v2, %s4032_s27 }
0x1e28   :  { %v1451_v10 = vpop.permute.xlu1 %1450 }
0x1e29   :  { %v1453_v3 = vmul.f32 %v3798_v35, %v1451_v10 }
0x1e2b   :  { %v1455_v6 = vrot.slane %v1453_v3, 4  ;;  %v1986_v7 = vsel %vm116_vm1, %v1985_v4, %v1453_v3 }
0x1e2d   :  { %1456 = vrot.lane.b32.xlu0 %v1455_v6, %s4033_s3 }
0x1e9f   :  { %v1457_v8 = vpop.permute.xlu0 %1456 }
0x1ea0   :  { %3379 = vmatmul.mubr.msk.f32.vlgmr.msra.gmra.mrb[12].mxu1 %vm195_vm3, %v1457_v8 }
0x1ea1   :  { %3623 = vmatpush3.bf16.msra.mxu1 %v4315_v58  ;;  %3400 = vmatprep.mubr.msk.f32.mxu1 %vm4030_vm0, %v4031_v1 }
0x1ea2   :  { %3624 = vmatprep.subr.bf16.mxu1 %v4029_v0 }
0x1ea5   :  { %3626 = vmatpush3.bf16.msra.mxu1 %v4318_v61 }
0x1ea6   :  { %3633 = vmatprep.subr.bf16.mxu1 %v4029_v0 }
0x1f73   :  { %v1526_v11 = vpop.f32.mrb[12].mxu1 }
0x1f74   :  { %v1531_v14 = vrot.slane %v1526_v11, 2  ;;  %v3380_v16 = vpop.f32.mrb[13].mxu1 }
0x1f76   :  { %v1533_v17 = vadd.f32 %v1531_v14, %v4346_v12 }
0x1f78   :  { %3801 = vtanh.f32 %v1533_v17  ;;  %v3064_v19 = vmul.f32 -1.442695, %v1533_v17 }
0x1f7a   :  { %3803 = vpow2.f32 %v3064_v19 }
0x1f82   :  { %v3802_v18 = vpop.eup %3801 }
0x1f83   :  { %1546 = vrot.lane.b32.xlu1 %v3802_v18, %s4032_s27 }
0x1f84   :  { %v3804_v20 = vpop.eup %3803 }
0x1f85   :  { %v1537_v21 = vadd.f32 1.0, %v3804_v20 }
0x1f87   :  { %3805 = vrcp.f32 %v1537_v21 }
0x1f91   :  { %v3806_v22 = vpop.eup %3805 }
0x1f92   :  { %v1544_v26 = vmul.f32 %v3806_v22, %v1542_v25 }
0x1ff5   :  { %v1547_v23 = vpop.permute.xlu1 %1546 }
0x1ff6   :  { %v1549_v24 = vmul.f32 %v3806_v22, %v1547_v23 }
0x1ff8   :  { %1551 = vrot.lane.b32.xlu0 %v1549_v24, %s4032_s27 }
0x206a   :  { %v1552_v27 = vpop.permute.xlu0 %1551 }
0x206b   :  { %v1554_v28 = vadd.f32 %v1552_v27, %v1544_v26 }
0x206d   :  { %3807 = vtanh.f32 %v1554_v28  ;;  %v1646_v44 = vrot.slane %v1554_v28, 6 }
0x2077   :  { %v3808_v12 = vpop.eup %3807 }
0x2078   :  { %1557 = vrot.lane.b32.xlu1 %v3808_v12, %s4032_s27 }
0x20ea   :  { %v1558_v29 = vpop.permute.xlu1 %1557 }
0x20eb   :  { %v1560_v30 = vmul.f32 %v3806_v22, %v1558_v29 }
0x20ed   :  { %v1562_v31 = vrot.slane %v1560_v30, 6  ;;  %v4395_v15 = vsel %vm1041_vm5, %v1986_v7, %v1560_v30 }
0x20ef   :  { %1563 = vrot.lane.b32.xlu0 %v1562_v31, %s4033_s3 }
0x2161   :  { %v1564_v32 = vpop.permute.xlu0 %1563 }
0x2162   :  { %3390 = vmatmul.mubr.msk.f32.vlgmr.msra.gmra.mrb[14].mxu0 %vm195_vm3, %v1564_v32 }
0x2163   :  { %3629 = vmatpush3.bf16.msra.mxu0 %v4315_v58  ;;  %3411 = vmatprep.mubr.msk.f32.mxu0 %vm4030_vm0, %v4031_v1 }
0x2164   :  { %3630 = vmatprep.subr.bf16.mxu0 %v4029_v0 }
0x2167   :  { %3632 = vmatpush3.bf16.msra.mxu0 %v4318_v61 }
0x2235   :  { %v1633_v33 = vpop.f32.mrb[14].mxu0 }
0x2236   :  { %v1637_v34 = vadd.f32 %v1633_v33, %v4344_v9  ;;  %v3391_v36 = vpop.f32.mrb[15].mxu0 }
0x2238   :  { %3809 = vtanh.f32 %v1637_v34  ;;  %v3066_v38 = vmul.f32 -1.442695, %v1637_v34 }
0x223a   :  { %3811 = vpow2.f32 %v3066_v38 }
0x2242   :  { %v3810_v37 = vpop.eup %3809 }
0x2243   :  { %1650 = vrot.lane.b32.xlu1 %v3810_v37, %s4032_s27 }
0x2244   :  { %v3812_v39 = vpop.eup %3811 }
0x2245   :  { %v1641_v40 = vadd.f32 1.0, %v3812_v39 }
0x2247   :  { %3813 = vrcp.f32 %v1641_v40 }
0x2251   :  { %v3814_v41 = vpop.eup %3813 }
0x2252   :  { %v1648_v45 = vmul.f32 %v3814_v41, %v1646_v44 }
0x22b5   :  { %v1651_v42 = vpop.permute.xlu1 %1650 }
0x22b6   :  { %v1653_v43 = vmul.f32 %v3814_v41, %v1651_v42 }
0x22b8   :  { %1655 = vrot.lane.b32.xlu0 %v1653_v43, %s4032_s27 }
0x232a   :  { %v1656_v46 = vpop.permute.xlu0 %1655 }
0x232b   :  { %v1658_v47 = vadd.f32 %v1656_v46, %v1648_v45 }
0x232d   :  { %3815 = vtanh.f32 %v1658_v47 }
0x2337   :  { %v3816_v48 = vpop.eup %3815 }
0x2338   :  { %1661 = vrot.lane.b32.xlu1 %v3816_v48, %s4032_s27 }
0x23aa   :  { %v1662_v49 = vpop.permute.xlu1 %1661 }
0x23ab   :  { %v4408_v13 = vmul.f32 %v3814_v41, %v1662_v49  ;;  %v1991_v49 = vld [vmem:[#allocation7] sm:$0xff] }
0x23ad   :  { %1666 = vrot.lane.b32.xlu0 %v4408_v13, %s4033_s3 }
0x241f   :  { %v1667_v50 = vpop.permute.xlu0 %1666 }
0x2420   :  { %3401 = vmatmul.mubr.msk.f32.vlgmr.msra.gmra.mrb[14].mxu1 %vm195_vm3, %v1667_v50  ;;  %v1995_v50 = vld [vmem:[#allocation8] sm:$0xff] }
0x2421   :  { %3635 = vmatpush3.bf16.msra.mxu1 %v4315_v58  ;;  %3422 = vmatprep.mubr.msk.f32.mxu1 %vm4030_vm0, %v4031_v1 }
0x2422   :  { %3636 = vmatprep.subr.bf16.mxu1 %v4029_v0 }
0x2425   :  { %3638 = vmatpush3.bf16.msra.mxu1 %v4318_v61  ;;  %v1752_v61 = vrot.slane %v1658_v47, 6 }
0x2426   :  { %3647 = vmatprep.subr.bf16.mxu1 %v4029_v0 }
0x24f3   :  { %v1736_v51 = vpop.f32.mrb[14].mxu1 }
0x24f4   :  { %v1741_v52 = vrot.slane %v1736_v51, 6  ;;  %v3402_v53 = vpop.f32.mrb[15].mxu1 }
0x24f5   :  { %v1993_v53 = vld [vmem:[#allocation7 + $0x10] sm:$0xff] }
0x24f6   :  { %v1743_v54 = vadd.f32 %v1741_v52, %v4344_v9  ;;  %v1996_v52 = vld [vmem:[#allocation8 + $0x8] sm:$0xff] }
0x24f8   :  { %3817 = vtanh.f32 %v1743_v54  ;;  %v3068_v56 = vmul.f32 -1.442695, %v1743_v54  ;;  %v1994_v54 = vld [vmem:[#allocation7 + $0x18] sm:$0xff] }
0x24fa   :  { %3819 = vpow2.f32 %v3068_v56  ;;  %v3643_v56 = vpack.c.bf16 %v1994_v54, %v1993_v53 }
0x2502   :  { %v3818_v55 = vpop.eup %3817 }
0x2503   :  { %1756 = vrot.lane.b32.xlu1 %v3818_v55, %s4032_s27  ;;  %v4442_v55 = vpack.c.bf16 %v1996_v52, %v1995_v50 }
0x2504   :  { %v3820_v58 = vpop.eup %3819 }
0x2505   :  { %v1747_v35 = vadd.f32 1.0, %v3820_v58  ;;  %v1997_v58 = vld [vmem:[#allocation8 + $0x10] sm:$0xff] }
0x2507   :  { %3821 = vrcp.f32 %v1747_v35 }
0x2511   :  { %v3822_v57 = vpop.eup %3821 }
0x2512   :  { %v1754_v5 = vmul.f32 %v3822_v57, %v1752_v61 }
0x2575   :  { %v1757_v59 = vpop.permute.xlu1 %1756 }
0x2576   :  { %v1759_v60 = vmul.f32 %v3822_v57, %v1757_v59 }
0x2578   :  { %1761 = vrot.lane.b32.xlu0 %v1759_v60, %s4032_s27 }
0x25ea   :  { %v1762_v62 = vpop.permute.xlu0 %1761 }
0x25eb   :  { %v1764_v63 = vadd.f32 %v1762_v62, %v1754_v5 }
0x25ed   :  { %3823 = vtanh.f32 %v1764_v63  ;;  %v1859_v23 = vrot.slane %v1764_v63, 6 }
0x25f7   :  { %v3824_v2 = vpop.eup %3823 }
0x25f8   :  { %1767 = vrot.lane.b32.xlu1 %v3824_v2, %s4032_s27  ;;  %v3073_v2 = vld [vmem:[%s4591_s9] ss:$0 sm:$0xff] }
0x266a   :  { %v1768_v10 = vpop.permute.xlu1 %1767 }
0x266b   :  { %v1770_v3 = vmul.f32 %v3822_v57, %v1768_v10 }
0x266d   :  { %v1772_v4 = vrot.slane %v1770_v3, 2  ;;  %v1988_v29 = vsel %vm1038_vm4, %v4408_v13, %v1770_v3  ;;  %v1992_v13 = vld [vmem:[#allocation7 + $0x8] sm:$0xff] }
0x266e   :  { %v3639_v51 = vpack.c.bf16 %v1992_v13, %v1991_v49 }
0x266f   :  { %1773 = vrot.lane.b32.xlu0 %v1772_v4, %s4033_s3 }
0x2670   :  { %3640 = vmatprep.subr.bf16.mxu0 %v3639_v51 }
0x26e1   :  { %v1774_v6 = vpop.permute.xlu0 %1773 }
0x26e2   :  { %3412 = vmatmul.mubr.msk.f32.vlgmr.msra.gmra.mrb[16].mxu0 %vm195_vm3, %v1774_v6 }
0x26e3   :  { %3642 = vmatpush3.bf16.msra.mxu0 %v3639_v51 }
0x26e4   :  { %3644 = vmatprep.subr.bf16.mxu0 %v3643_v56 }
0x26e7   :  { %3646 = vmatpush3.bf16.msra.mxu0 %v3643_v56 }
0x26e8   :  { %3653 = vmatprep.subr.bf16.mxu0 %v4029_v0 }
0x27b5   :  { %v1843_v7 = vpop.f32.mrb[16].mxu0 }
0x27b6   :  { %v1848_v8 = vrot.slane %v1843_v7, 4  ;;  %v3413_v11 = vpop.f32.mrb[17].mxu0 }
0x27b8   :  { %v1850_v14 = vadd.f32 %v1848_v8, %v4344_v9 }
0x27ba   :  { %3825 = vtanh.f32 %v1850_v14  ;;  %v3070_v17 = vmul.f32 -1.442695, %v1850_v14 }
0x27bc   :  { %3827 = vpow2.f32 %v3070_v17 }
0x27c4   :  { %v3826_v16 = vpop.eup %3825 }
0x27c5   :  { %1863 = vrot.lane.b32.xlu1 %v3826_v16, %s4032_s27 }
0x27c6   :  { %v3828_v18 = vpop.eup %3827 }
0x27c7   :  { %v1854_v19 = vadd.f32 1.0, %v3828_v18 }
0x27c9   :  { %3829 = vrcp.f32 %v1854_v19 }
0x27d3   :  { %v3830_v20 = vpop.eup %3829 }
0x27d4   :  { %v1861_v24 = vmul.f32 %v3830_v20, %v1859_v23 }
0x2837   :  { %v1864_v21 = vpop.permute.xlu1 %1863 }
0x2838   :  { %v1866_v22 = vmul.f32 %v3830_v20, %v1864_v21 }
0x283a   :  { %1868 = vrot.lane.b32.xlu0 %v1866_v22, %s4032_s27 }
0x28ac   :  { %v1869_v25 = vpop.permute.xlu0 %1868 }
0x28ad   :  { %v1871_v26 = vadd.f32 %v1869_v25, %v1861_v24 }
0x28af   :  { %3831 = vtanh.f32 %v1871_v26  ;;  %v1966_v45 = vrot.slane %v1871_v26, 6 }
0x28b9   :  { %v3832_v27 = vpop.eup %3831 }
0x28ba   :  { %1874 = vrot.lane.b32.xlu1 %v3832_v27, %s4032_s27 }
0x292c   :  { %v1875_v28 = vpop.permute.xlu1 %1874 }
0x292d   :  { %v1877_v12 = vmul.f32 %v3830_v20, %v1875_v28 }
0x292f   :  { %v1879_v30 = vrot.slane %v1877_v12, 4  ;;  %v1989_v31 = vsel %vm116_vm1, %v1988_v29, %v1877_v12 }
0x2931   :  { %1880 = vrot.lane.b32.xlu0 %v1879_v30, %s4033_s3 }
0x29a3   :  { %v1881_v32 = vpop.permute.xlu0 %1880 }
0x29a4   :  { %3423 = vmatmul.mubr.msk.f32.vlgmr.msra.gmra.mrb[16].mxu1 %vm195_vm3, %v1881_v32 }
0x29a5   :  { %3444 = vmatprep.mubr.msk.f32.mxu1 %vm4030_vm0, %v4031_v1  ;;  %3649 = vmatpush3.bf16.msra.mxu1 %v4442_v55 }
0x29a6   :  { %3650 = vmatprep.subr.bf16.mxu1 %v4029_v0 }
0x2a77   :  { %v1950_v33 = vpop.f32.mrb[16].mxu1 }
0x2a78   :  { %v1955_v34 = vrot.slane %v1950_v33, 2  ;;  %v3424_v36 = vpop.f32.mrb[17].mxu1 }
0x2a7a   :  { %v1957_v37 = vadd.f32 %v1955_v34, %v4344_v9 }
0x2a7c   :  { %3833 = vtanh.f32 %v1957_v37  ;;  %v3072_v39 = vmul.f32 -1.442695, %v1957_v37 }
0x2a7e   :  { %3835 = vpow2.f32 %v3072_v39 }
0x2a86   :  { %v3834_v38 = vpop.eup %3833 }
0x2a87   :  { %1970 = vrot.lane.b32.xlu1 %v3834_v38, %s4032_s27 }
0x2a88   :  { %v3836_v40 = vpop.eup %3835 }
0x2a89   :  { %v1961_v41 = vadd.f32 1.0, %v3836_v40 }
0x2a8b   :  { %3837 = vrcp.f32 %v1961_v41 }
0x2a95   :  { %v3838_v42 = vpop.eup %3837 }
0x2a96   :  { %v1968_v46 = vmul.f32 %v3838_v42, %v1966_v45 }
0x2af9   :  { %v1971_v43 = vpop.permute.xlu1 %1970 }
0x2afa   :  { %v1973_v44 = vmul.f32 %v3838_v42, %v1971_v43 }
0x2afc   :  { %1975 = vrot.lane.b32.xlu0 %v1973_v44, %s4032_s27 }
0x2b00   :  { %2008 = vrot.lane.b32.xlu0 %v4395_v15, %s4033_s3  ;;  %v1998_v15 = vld [vmem:[#allocation8 + $0x18] sm:$0xff] }
0x2b01   :  { %v4445_v35 = vpack.c.bf16 %v1998_v15, %v1997_v58 }
0x2b03   :  { %3652 = vmatpush3.bf16.msra.mxu1 %v4445_v35 }
0x2b04   :  { %3659 = vmatprep.subr.bf16.mxu1 %v4029_v0 }
0x2b06   :  { %3445 = vmatmul.mubr.f32.vlgmr.msra.gmra.mrb[18].mxu1 %v4031_v1 }
0x2b07   :  { %3661 = vmatpush3.bf16.msra.mxu1 %v4442_v55  ;;  %3466 = vmatprep.mubr.msk.f32.mxu1 %vm4030_vm0, %v4031_v1 }
0x2b08   :  { %3662 = vmatprep.subr.bf16.mxu1 %v4029_v0 }
0x2b0b   :  { %3664 = vmatpush3.bf16.msra.mxu1 %v4445_v35 }
0x2b0c   :  { %3671 = vmatprep.subr.bf16.mxu1 %v4029_v0 }
0x2b6e   :  { %v1976_v9 = vpop.permute.xlu0 %1975 }
0x2b6f   :  { %v1978_v47 = vadd.f32 %v1976_v9, %v1968_v46 }
0x2b71   :  { %3839 = vtanh.f32 %v1978_v47 }
0x2b72   :  { %v2009_v48 = vpop.permute.xlu0 %2008 }
0x2b73   :  { %3433 = vmatprep.mubr.msk.f32.mxu0 %vm195_vm3, %v2009_v48 }
0x2b7b   :  { %v3840_v57 = vpop.eup %3839 }
0x2b7c   :  { %1981 = vrot.lane.b32.xlu1 %v3840_v57, %s4032_s27 }
0x2bd9   :  { %v2157_v62 = vpop.f32.mrb[18].mxu1 }
0x2bda   :  { %v3446_v63 = vpop.f32.mrb[19].mxu1 }
0x2bee   :  { %v1982_v59 = vpop.permute.xlu1 %1981 }
0x2bef   :  { %v1984_v60 = vmul.f32 %v3838_v42, %v1982_v59 }
0x2bf1   :  { %v1990_v61 = vsel %vm1041_vm5, %v1989_v31, %v1984_v60 }
0x2bf2   :  { %2010 = vrot.lane.b32.xlu1 %v1990_v61, %s4033_s3 }
0x2c64   :  { %v2011_v5 = vpop.permute.xlu1 %2010 }
0x2c65   :  { %3434 = vmatmul.mubr.msk.f32.vlgmr.msra.gmra.mrb[18].mxu0 %vm195_vm3, %v2011_v5 }
0x2c66   :  { %3655 = vmatpush3.bf16.msra.mxu0 %v4442_v55  ;;  %3455 = vmatprep.mubr.msk.f32.mxu0 %vm4030_vm0, %v4031_v1 }
0x2c67   :  { %3656 = vmatprep.subr.bf16.mxu0 %v4029_v0 }
0x2c6a   :  { %3658 = vmatpush3.bf16.msra.mxu0 %v4445_v35 }
0x2c6b   :  { %3665 = vmatprep.subr.bf16.mxu0 %v4029_v0 }
0x2d38   :  { %v3435_v10 = vpop.f32.mrb[18].mxu0 }
0x2d39   :  { %v4471_v3 = vadd.f32 %v3435_v10, %v3073_v2  ;;  %v2082_v4 = vpop.f32.mrb[19].mxu0 }
0x2d3a   :  { %v4473_v6 = vadd.f32 %v3073_v2, %v2082_v4 }
0x2d3c   :  { %v2161_v7 = vadd.f32 %v2157_v62, %v4473_v6 }
0x2d3e   :  { %3841 = vtanh.f32 %v2161_v7  ;;  %v3076_v11 = vmul.f32 -1.442695, %v2161_v7 }
0x2d40   :  { %3843 = vpow2.f32 %v3076_v11 }
0x2d48   :  { %v3842_v8 = vpop.eup %3841 }
0x2d49   :  { %2171 = vrot.lane.b32.xlu0 %v3842_v8, %s4032_s27 }
0x2d4a   :  { %v3844_v14 = vpop.eup %3843 }
0x2d4b   :  { %v2165_v16 = vadd.f32 1.0, %v3844_v14 }
0x2d4d   :  { %3845 = vrcp.f32 %v2165_v16 }
0x2d57   :  { %v3846_v17 = vpop.eup %3845 }
0x2d58   :  { %v2169_v20 = vmul.f32 0.0, %v3846_v17 }
0x2dbb   :  { %v2172_v18 = vpop.permute.xlu0 %2171 }
0x2dbc   :  { %v2174_v19 = vmul.f32 %v3846_v17, %v2172_v18 }
0x2dbe   :  { %2176 = vrot.lane.b32.xlu1 %v2174_v19, %s4032_s27 }
0x2e30   :  { %v2177_v21 = vpop.permute.xlu1 %2176 }
0x2e31   :  { %v2179_v22 = vadd.f32 %v2177_v21, %v2169_v20 }
0x2e33   :  { %3847 = vtanh.f32 %v2179_v22  ;;  %v2273_v38 = vrot.slane %v2179_v22, 6 }
0x2e3d   :  { %v3848_v23 = vpop.eup %3847 }
0x2e3e   :  { %2182 = vrot.lane.b32.xlu0 %v3848_v23, %s4032_s27 }
0x2eb0   :  { %v2183_v24 = vpop.permute.xlu0 %2182 }
0x2eb1   :  { %v2185_v25 = vmul.f32 %v3846_v17, %v2183_v24 }
0x2eb3   :  { %2187 = vrot.lane.b32.xlu1 %v2185_v25, %s4033_s3 }
0x2f25   :  { %v2188_v26 = vpop.permute.xlu1 %2187 }
0x2f26   :  { %3456 = vmatmul.mubr.msk.f32.vlgmr.msra.gmra.mrb[20].mxu0 %vm195_vm3, %v2188_v26 }
0x2f27   :  { %3667 = vmatpush3.bf16.msra.mxu0 %v4442_v55  ;;  %3477 = vmatprep.mubr.msk.f32.mxu0 %vm4030_vm0, %v4031_v1 }
0x2f28   :  { %3668 = vmatprep.subr.bf16.mxu0 %v4029_v0 }
0x2f2b   :  { %3670 = vmatpush3.bf16.msra.mxu0 %v4445_v35 }
0x2f2c   :  { %3677 = vmatprep.subr.bf16.mxu0 %v4029_v0 }
0x2ff9   :  { %v2257_v27 = vpop.f32.mrb[20].mxu0 }
0x2ffa   :  { %v2262_v28 = vrot.slane %v2257_v27, 6  ;;  %v3457_v12 = vpop.f32.mrb[21].mxu0 }
0x2ffc   :  { %v2264_v29 = vadd.f32 %v2262_v28, %v4473_v6 }
0x2ffe   :  { %3849 = vtanh.f32 %v2264_v29  ;;  %v3078_v31 = vmul.f32 -1.442695, %v2264_v29 }
0x3000   :  { %3851 = vpow2.f32 %v3078_v31 }
0x3008   :  { %v3850_v30 = vpop.eup %3849 }
0x3009   :  { %2277 = vrot.lane.b32.xlu0 %v3850_v30, %s4032_s27 }
0x300a   :  { %v3852_v32 = vpop.eup %3851 }
0x300b   :  { %v2268_v33 = vadd.f32 1.0, %v3852_v32 }
0x300d   :  { %3853 = vrcp.f32 %v2268_v33 }
0x3017   :  { %v3854_v34 = vpop.eup %3853 }
0x3018   :  { %v2275_v39 = vmul.f32 %v3854_v34, %v2273_v38 }
0x307b   :  { %v2278_v36 = vpop.permute.xlu0 %2277 }
0x307c   :  { %v2280_v37 = vmul.f32 %v3854_v34, %v2278_v36 }
0x307e   :  { %2282 = vrot.lane.b32.xlu1 %v2280_v37, %s4032_s27 }
0x30f0   :  { %v2283_v40 = vpop.permute.xlu1 %2282 }
0x30f1   :  { %v2285_v41 = vadd.f32 %v2283_v40, %v2275_v39 }
0x30f3   :  { %3855 = vtanh.f32 %v2285_v41  ;;  %v2380_v58 = vrot.slane %v2285_v41, 6 }
0x30fd   :  { %v3856_v42 = vpop.eup %3855 }
0x30fe   :  { %2288 = vrot.lane.b32.xlu0 %v3856_v42, %s4032_s27 }
0x3170   :  { %v2289_v43 = vpop.permute.xlu0 %2288 }
0x3171   :  { %v2291_v44 = vmul.f32 %v3854_v34, %v2289_v43 }
0x3173   :  { %v2293_v45 = vrot.slane %v2291_v44, 2 }
0x3175   :  { %2294 = vrot.lane.b32.xlu1 %v2293_v45, %s4033_s3 }
0x31e7   :  { %v2295_v46 = vpop.permute.xlu1 %2294 }
0x31e8   :  { %3467 = vmatmul.mubr.msk.f32.vlgmr.msra.gmra.mrb[20].mxu1 %vm195_vm3, %v2295_v46 }
0x31e9   :  { %3673 = vmatpush3.bf16.msra.mxu1 %v4442_v55  ;;  %3488 = vmatprep.mubr.msk.f32.mxu1 %vm4030_vm0, %v4031_v1 }
0x31ea   :  { %3674 = vmatprep.subr.bf16.mxu1 %v4029_v0 }
0x31ed   :  { %3676 = vmatpush3.bf16.msra.mxu1 %v4445_v35 }
0x31ee   :  { %3683 = vmatprep.subr.bf16.mxu1 %v4029_v0 }
0x32bb   :  { %v2364_v9 = vpop.f32.mrb[20].mxu1 }
0x32bc   :  { %v2369_v47 = vrot.slane %v2364_v9, 4  ;;  %v3468_v48 = vpop.f32.mrb[21].mxu1 }
0x32be   :  { %v2371_v49 = vadd.f32 %v2369_v47, %v4473_v6 }
0x32c0   :  { %3857 = vtanh.f32 %v2371_v49  ;;  %v3080_v50 = vmul.f32 -1.442695, %v2371_v49 }
0x32c2   :  { %3859 = vpow2.f32 %v3080_v50 }
0x32ca   :  { %v3858_v13 = vpop.eup %3857 }
0x32cb   :  { %2384 = vrot.lane.b32.xlu0 %v3858_v13, %s4032_s27 }
0x32cc   :  { %v3860_v51 = vpop.eup %3859 }
0x32cd   :  { %v2375_v52 = vadd.f32 1.0, %v3860_v51 }
0x32cf   :  { %3861 = vrcp.f32 %v2375_v52 }
0x32d9   :  { %v3862_v53 = vpop.eup %3861 }
0x32da   :  { %v2382_v15 = vmul.f32 %v3862_v53, %v2380_v58 }
0x333d   :  { %v2385_v54 = vpop.permute.xlu0 %2384 }
0x333e   :  { %v2387_v56 = vmul.f32 %v3862_v53, %v2385_v54 }
0x3340   :  { %2389 = vrot.lane.b32.xlu1 %v2387_v56, %s4032_s27 }
0x33b2   :  { %v2390_v57 = vpop.permute.xlu1 %2389 }
0x33b3   :  { %v2392_v59 = vadd.f32 %v2390_v57, %v2382_v15 }
0x33b5   :  { %3863 = vtanh.f32 %v2392_v59  ;;  %v2487_v20 = vrot.slane %v2392_v59, 6 }
0x33bf   :  { %v3864_v60 = vpop.eup %3863 }
0x33c0   :  { %2395 = vrot.lane.b32.xlu0 %v3864_v60, %s4032_s27 }
0x3432   :  { %v2396_v61 = vpop.permute.xlu0 %2395 }
0x3433   :  { %v2398_v5 = vmul.f32 %v3862_v53, %v2396_v61 }
0x3435   :  { %v2400_v62 = vrot.slane %v2398_v5, 4 }
0x3437   :  { %2401 = vrot.lane.b32.xlu1 %v2400_v62, %s4033_s3 }
0x34a9   :  { %v2402_v63 = vpop.permute.xlu1 %2401 }
0x34aa   :  { %3478 = vmatmul.mubr.msk.f32.vlgmr.msra.gmra.mrb[22].mxu0 %vm195_vm3, %v2402_v63 }
0x34ab   :  { %3679 = vmatpush3.bf16.msra.mxu0 %v4442_v55  ;;  %3499 = vmatprep.mubr.msk.f32.mxu0 %vm4030_vm0, %v4031_v1 }
0x34ac   :  { %3680 = vmatprep.subr.bf16.mxu0 %v4029_v0 }
0x34af   :  { %3682 = vmatpush3.bf16.msra.mxu0 %v4445_v35 }
0x34b0   :  { %3689 = vmatprep.subr.bf16.mxu0 %v4029_v0 }
0x357d   :  { %v2471_v2 = vpop.f32.mrb[22].mxu0 }
0x357e   :  { %v2476_v10 = vrot.slane %v2471_v2, 2  ;;  %v3479_v4 = vpop.f32.mrb[23].mxu0 }
0x3580   :  { %v2478_v7 = vadd.f32 %v2476_v10, %v4473_v6 }
0x3582   :  { %3865 = vtanh.f32 %v2478_v7  ;;  %v3082_v11 = vmul.f32 -1.442695, %v2478_v7 }
0x3584   :  { %3867 = vpow2.f32 %v3082_v11 }
0x358c   :  { %v3866_v8 = vpop.eup %3865 }
0x358d   :  { %2491 = vrot.lane.b32.xlu0 %v3866_v8, %s4032_s27 }
0x358e   :  { %v3868_v14 = vpop.eup %3867 }
0x358f   :  { %v2482_v16 = vadd.f32 1.0, %v3868_v14 }
0x3591   :  { %3869 = vrcp.f32 %v2482_v16 }
0x359b   :  { %v3870_v17 = vpop.eup %3869 }
0x359c   :  { %v2489_v21 = vmul.f32 %v3870_v17, %v2487_v20 }
0x35ff   :  { %v2492_v18 = vpop.permute.xlu0 %2491 }
0x3600   :  { %v2494_v19 = vmul.f32 %v3870_v17, %v2492_v18 }
0x3602   :  { %2496 = vrot.lane.b32.xlu1 %v2494_v19, %s4032_s27 }
0x3674   :  { %v2497_v22 = vpop.permute.xlu1 %2496 }
0x3675   :  { %v2499_v23 = vadd.f32 %v2497_v22, %v2489_v21 }
0x3677   :  { %3871 = vtanh.f32 %v2499_v23  ;;  %v2591_v38 = vrot.slane %v2499_v23, 6 }
0x3681   :  { %v3872_v6 = vpop.eup %3871 }
0x3682   :  { %2502 = vrot.lane.b32.xlu0 %v3872_v6, %s4032_s27 }
0x36f4   :  { %v2503_v24 = vpop.permute.xlu0 %2502 }
0x36f5   :  { %v2505_v25 = vmul.f32 %v3870_v17, %v2503_v24 }
0x36f7   :  { %v2507_v26 = vrot.slane %v2505_v25, 6 }
0x36f9   :  { %2508 = vrot.lane.b32.xlu1 %v2507_v26, %s4033_s3 }
0x376b   :  { %v2509_v27 = vpop.permute.xlu1 %2508 }
0x376c   :  { %3489 = vmatmul.mubr.msk.f32.vlgmr.msra.gmra.mrb[22].mxu1 %vm195_vm3, %v2509_v27 }
0x376d   :  { %3685 = vmatpush3.bf16.msra.mxu1 %v4442_v55  ;;  %3510 = vmatprep.mubr.msk.f32.mxu1 %vm4030_vm0, %v4031_v1 }
0x376e   :  { %3686 = vmatprep.subr.bf16.mxu1 %v4029_v0 }
0x3771   :  { %3688 = vmatpush3.bf16.msra.mxu1 %v4445_v35 }
0x3772   :  { %3695 = vmatprep.subr.bf16.mxu1 %v4029_v0 }
0x383f   :  { %v2578_v28 = vpop.f32.mrb[22].mxu1 }
0x3840   :  { %v2582_v12 = vadd.f32 %v2578_v28, %v4471_v3  ;;  %v3490_v29 = vpop.f32.mrb[23].mxu1 }
0x3842   :  { %3873 = vtanh.f32 %v2582_v12  ;;  %v3084_v31 = vmul.f32 -1.442695, %v2582_v12 }
0x3844   :  { %3875 = vpow2.f32 %v3084_v31 }
0x384c   :  { %v3874_v30 = vpop.eup %3873 }
0x384d   :  { %2595 = vrot.lane.b32.xlu0 %v3874_v30, %s4032_s27 }
0x384e   :  { %v3876_v32 = vpop.eup %3875 }
0x384f   :  { %v2586_v33 = vadd.f32 1.0, %v3876_v32 }
0x3851   :  { %3877 = vrcp.f32 %v2586_v33 }
0x385b   :  { %v3878_v34 = vpop.eup %3877 }
0x385c   :  { %v2593_v39 = vmul.f32 %v3878_v34, %v2591_v38 }
0x38bf   :  { %v2596_v36 = vpop.permute.xlu0 %2595 }
0x38c0   :  { %v2598_v37 = vmul.f32 %v3878_v34, %v2596_v36 }
0x38c2   :  { %2600 = vrot.lane.b32.xlu1 %v2598_v37, %s4032_s27 }
0x3934   :  { %v2601_v40 = vpop.permute.xlu1 %2600 }
0x3935   :  { %v2603_v41 = vadd.f32 %v2601_v40, %v2593_v39  ;;  %v2931_v39 = vld [vmem:[%s4592_s10 + $0x8] sm:$0xff]  ;;  %v2932_v40 = vld [vmem:[%s4592_s10 + $0x10] sm:$0xff] }
0x3937   :  { %3879 = vtanh.f32 %v2603_v41 }
0x3941   :  { %v3880_v42 = vpop.eup %3879 }
0x3942   :  { %2606 = vrot.lane.b32.xlu0 %v3880_v42, %s4032_s27  ;;  %v2933_v42 = vld [vmem:[%s4592_s10 + $0x18] sm:$0xff] }
0x39b4   :  { %v2607_v43 = vpop.permute.xlu0 %2606 }
0x39b5   :  { %v2609_v44 = vmul.f32 %v3878_v34, %v2607_v43  ;;  %v3699_v43 = vpack.c.bf16 %v2933_v42, %v2932_v40 }
0x39b7   :  { %2611 = vrot.lane.b32.xlu1 %v2609_v44, %s4033_s3 }
0x3a29   :  { %v2612_v45 = vpop.permute.xlu1 %2611 }
0x3a2a   :  { %3500 = vmatmul.mubr.msk.f32.vlgmr.msra.gmra.mrb[24].mxu0 %vm195_vm3, %v2612_v45 }
0x3a2b   :  { %3691 = vmatpush3.bf16.msra.mxu0 %v4442_v55  ;;  %3521 = vmatprep.mubr.msk.f32.mxu0 %vm4030_vm0, %v4031_v1 }
0x3a2c   :  { %3692 = vmatprep.subr.bf16.mxu0 %v4029_v0 }
0x3a2f   :  { %3694 = vmatpush3.bf16.msra.mxu0 %v4445_v35  ;;  %v2697_v35 = vrot.slane %v2603_v41, 6 }
0x3afd   :  { %v2681_v46 = vpop.f32.mrb[24].mxu0 }
0x3afe   :  { %v2686_v9 = vrot.slane %v2681_v46, 6  ;;  %v3501_v47 = vpop.f32.mrb[25].mxu0 }
0x3b00   :  { %v2688_v48 = vadd.f32 %v2686_v9, %v4471_v3 }
0x3b02   :  { %3881 = vtanh.f32 %v2688_v48  ;;  %v3086_v13 = vmul.f32 -1.442695, %v2688_v48  ;;  %v3091_v48 = vld [vmem:[%s4593_s11] ss:$0 sm:$0xff] }
0x3b04   :  { %3883 = vpow2.f32 %v3086_v13 }
0x3b0c   :  { %v3882_v49 = vpop.eup %3881 }
0x3b0d   :  { %2701 = vrot.lane.b32.xlu0 %v3882_v49, %s4032_s27 }
0x3b0e   :  { %v3884_v50 = vpop.eup %3883 }
0x3b0f   :  { %v2692_v55 = vadd.f32 1.0, %v3884_v50 }
0x3b11   :  { %3885 = vrcp.f32 %v2692_v55 }
0x3b1b   :  { %v3886_v51 = vpop.eup %3885 }
0x3b1c   :  { %v2699_v54 = vmul.f32 %v3886_v51, %v2697_v35 }
0x3b7f   :  { %v2702_v52 = vpop.permute.xlu0 %2701 }
0x3b80   :  { %v2704_v53 = vmul.f32 %v3886_v51, %v2702_v52 }
0x3b82   :  { %2706 = vrot.lane.b32.xlu1 %v2704_v53, %s4032_s27 }
0x3bf4   :  { %v2707_v56 = vpop.permute.xlu1 %2706 }
0x3bf5   :  { %v2709_v58 = vadd.f32 %v2707_v56, %v2699_v54 }
0x3bf7   :  { %3887 = vtanh.f32 %v2709_v58 }
0x3c01   :  { %v3888_v15 = vpop.eup %3887 }
0x3c02   :  { %2712 = vrot.lane.b32.xlu0 %v3888_v15, %s4032_s27 }
0x3c74   :  { %v2713_v57 = vpop.permute.xlu0 %2712 }
0x3c75   :  { %v2715_v59 = vmul.f32 %v3886_v51, %v2713_v57 }
0x3c77   :  { %v2717_v60 = vrot.slane %v2715_v59, 2 }
0x3c79   :  { %2718 = vrot.lane.b32.xlu1 %v2717_v60, %s4033_s3 }
0x3ceb   :  { %v2719_v61 = vpop.permute.xlu1 %2718 }
0x3cec   :  { %3511 = vmatmul.mubr.msk.f32.vlgmr.msra.gmra.mrb[24].mxu1 %vm195_vm3, %v2719_v61 }
0x3ced   :  { %3532 = vmatprep.mubr.msk.f32.mxu1 %vm4030_vm0, %v4031_v1  ;;  %v2804_v1 = vrot.slane %v2709_v58, 6 }
0x3dbf   :  { %v2788_v5 = vpop.f32.mrb[24].mxu1 }
0x3dc0   :  { %v2793_v62 = vrot.slane %v2788_v5, 4  ;;  %v3512_v63 = vpop.f32.mrb[25].mxu1 }
0x3dc2   :  { %v2795_v2 = vadd.f32 %v2793_v62, %v4471_v3 }
0x3dc4   :  { %3889 = vtanh.f32 %v2795_v2  ;;  %v3088_v4 = vmul.f32 -1.442695, %v2795_v2 }
0x3dc6   :  { %3891 = vpow2.f32 %v3088_v4 }
0x3dce   :  { %v3890_v10 = vpop.eup %3889 }
0x3dcf   :  { %2808 = vrot.lane.b32.xlu0 %v3890_v10, %s4032_s27 }
0x3dd0   :  { %v3892_v7 = vpop.eup %3891 }
0x3dd1   :  { %v2799_v8 = vadd.f32 1.0, %v3892_v7 }
0x3dd3   :  { %3893 = vrcp.f32 %v2799_v8 }
0x3ddd   :  { %v3894_v11 = vpop.eup %3893 }
0x3dde   :  { %v2806_v17 = vmul.f32 %v3894_v11, %v2804_v1 }
0x3e41   :  { %v2809_v14 = vpop.permute.xlu0 %2808 }
0x3e42   :  { %v2811_v16 = vmul.f32 %v3894_v11, %v2809_v14 }
0x3e44   :  { %2813 = vrot.lane.b32.xlu1 %v2811_v16, %s4032_s27 }
0x3eb6   :  { %v2814_v18 = vpop.permute.xlu1 %2813 }
0x3eb7   :  { %v2816_v19 = vadd.f32 %v2814_v18, %v2806_v17 }
0x3eb9   :  { %3895 = vtanh.f32 %v2816_v19  ;;  %v2911_v34 = vrot.slane %v2816_v19, 6 }
0x3ec3   :  { %v3896_v20 = vpop.eup %3895 }
0x3ec4   :  { %2819 = vrot.lane.b32.xlu0 %v3896_v20, %s4032_s27 }
0x3f36   :  { %v2820_v21 = vpop.permute.xlu0 %2819 }
0x3f37   :  { %v2822_v22 = vmul.f32 %v3894_v11, %v2820_v21 }
0x3f39   :  { %v2824_v23 = vrot.slane %v2822_v22, 4 }
0x3f3b   :  { %2825 = vrot.lane.b32.xlu1 %v2824_v23, %s4033_s3 }
0x3fad   :  { %v2826_v6 = vpop.permute.xlu1 %2825 }
0x3fae   :  { %3522 = vmatmul.mubr.msk.f32.vlgmr.msra.gmra.mrb[26].mxu0 %vm195_vm3, %v2826_v6 }
0x4081   :  { %v2895_v24 = vpop.f32.mrb[26].mxu0 }
0x4082   :  { %v2900_v25 = vrot.slane %v2895_v24, 2  ;;  %v3523_v26 = vpop.f32.mrb[27].mxu0 }
0x4084   :  { %v2902_v27 = vadd.f32 %v2900_v25, %v4471_v3  ;;  %v2930_v3 = vld [vmem:[%s4592_s10] sm:$0xff]  ;;  %s4034_s10 = smov [#allocation10]  }
0x4085   :  { %v3696_v41 = vpack.c.bf16 %v2931_v39, %v2930_v3  ;;  %s3025_s25 = sshll.u32 %s4034_s10, 4  ;;  %s3026_s25 = int_to_ptr.vmem [resolvable:$true] %s3025_s25 }
0x4086   :  { %3897 = vtanh.f32 %v2902_v27  ;;  %v3090_v12 = vmul.f32 -1.442695, %v2902_v27  ;;  %s3993_s26 = scalar_lea.vmem %s3026_s25, 32  ;;  %p3998_p5 = scmp.lt.s32.totalorder %s3026_s25, %s3026_s25 }
0x4087   :  { %3697 = vmatpush3.bf16.msra.mxu1 %v3696_v41  ;;  %p3994_p4 = scmp.ne.s32.totalorder %s3026_s25, %s3993_s26  ;;  %p3999_p6 = scmp.lt.s32.totalorder %s3993_s26, %s3993_s26 }
0x4088   :  { %3899 = vpow2.f32 %v3090_v12  ;;  %3698 = vmatprep.subr.bf16.mxu1 %v4029_v0 }
0x4089   :  { %p4000_p7 = por %p3999_p6, %p3998_p5 }
0x408b   :  { %3700 = vmatpush3.bf16.msra.mxu1 %v3699_v43  ;;  %p4001_p8 = pnand %p4000_p7, %p3994_p4 }
0x4090   :  { %v3898_v28 = vpop.eup %3897 }
0x4091   :  { %2915 = vrot.lane.b32.xlu0 %v3898_v28, %s4032_s27 }
0x4092   :  { %v3900_v29 = vpop.eup %3899 }
0x4093   :  { %v2906_v30 = vadd.f32 1.0, %v3900_v29 }
0x4095   :  { %3901 = vrcp.f32 %v2906_v30 }
0x409f   :  { %v3902_v31 = vpop.eup %3901 }
0x40a0   :  { %v2913_v36 = vmul.f32 %v3902_v31, %v2911_v34 }
0x4103   :  { %v2916_v32 = vpop.permute.xlu0 %2915 }
0x4104   :  { %v2918_v33 = vmul.f32 %v3902_v31, %v2916_v32 }
0x4106   :  { %2920 = vrot.lane.b32.xlu1 %v2918_v33, %s4032_s27 }
0x4178   :  { %v2921_v37 = vpop.permute.xlu1 %2920 }
0x4179   :  { %v2923_v38 = vadd.f32 %v2921_v37, %v2913_v36 }
0x417b   :  { %3903 = vtanh.f32 %v2923_v38 }
0x4185   :  { %v3904_v44 = vpop.eup %3903 }
0x4186   :  { %2926 = vrot.lane.b32.xlu0 %v3904_v44, %s4032_s27 }
0x41f8   :  { %v2927_v45 = vpop.permute.xlu0 %2926 }
0x41f9   :  { %v2929_v46 = vmul.f32 %v3902_v31, %v2927_v45 }
0x41fb   :  { %v2942_v9 = vrot.slane %v2929_v46, 6 }
0x41fd   :  { %2943 = vrot.lane.b32.xlu1 %v2942_v9, %s4033_s3 }
0x426f   :  { %v2944_v47 = vpop.permute.xlu1 %2943 }
0x4270   :  { %3533 = vmatmul.mubr.msk.f32.vlgmr.msra.gmra.mrb[26].mxu1 %vm195_vm3, %v2944_v47 }
0x4343   :  { %v3013_v49 = vpop.f32.mrb[26].mxu1 }
0x4344   :  { %v3014_v0 = vadd.f32 %v3091_v48, %v3013_v49  ;;  %v3534_v13 = vpop.f32.mrb[27].mxu1 }
0x4346   :  { %3018 = vst.msk [vmem:[#allocation10] sm:$0x3] %vm3017_vm6, %v3014_v0 }
0x4347   :  { %4004 = shalt.err (!%p4001_p8)
}
0x4348   :  { %s4005_s27 = scalar_lea.hbm %s4594_s12, 32 }
0x4349   :  { %p4006_p9 = scmp.ne.s32.totalorder %s4594_s12, %s4005_s27  ;;  %p4009_p10 = scmp.lt.u32.totalorder %s4005_s27, %s4594_s12 }
0x434b   :  { %p4011_p11 = pnand %p4009_p10, %p4006_p9 }
0x434d   :  { %4014 = shalt.err (!%p4011_p11)
}
0x434e   :  { %3028 = dma.vmem_to_hbm [thread:$0]  %s3026_s25, 32, %s4594_s12, [#allocation4]  }
0x434f   :  { %4021 = dma.done.wait [#allocation4], 32  }
0x4350   :  { %4022 = vsyncadd [#allocation4], 4294967264 }
0x4351   :  { %3032 = vsyncpa [#allocation3], 1 }
0x4352   :  { %3033 = vsyncpa [#allocation6], 1 }
0x4353   :  { %3034 = vsyncpa [#allocation9], 1 }
0x4354   :  { %3035 = vsyncpa [#allocation4], 1 }

</bundles_post_ra>
